<compile_context>
chip_gen: v7x
topology: tpu7x:2x2x1
jax: 0.10.0
libtpu: 0.0.40
codegen_flags: <defaults>
</compile_context>

<pallas_src>
import numpy as np
import jax
import jax.numpy as jnp
from jax.experimental import pallas as pl
from jax.experimental.pallas import tpu as pltpu


def _round_up(x, m):
    return ((x + m - 1) // m) * m


def _zero_map(ndim):
    return lambda i: (0,) * ndim


# ---------------------------------------------------------------------------
# Weight packing (host side, once)
# ---------------------------------------------------------------------------

def _pack_w(w, Dp, H, Gp):
    """Torch (4H, Din) gate-stacked weight -> (Dp, Gp), gate g in columns
    [g*H, (g+1)*H). Padded rows/cols are zero so garbage lanes of h never
    leak into the gates."""
    din = w.shape[1]
    out = jnp.zeros((Dp, Gp), jnp.float32)
    for g in range(4):
        out = out.at[:din, g * H:(g + 1) * H].set(w[g * H:(g + 1) * H, :].T)
    return out


def _pack_b(b_ih, b_hh, H, Gp):
    b = jnp.zeros((1, Gp), jnp.float32)
    for g in range(4):
        b = b.at[0, g * H:(g + 1) * H].set(
            b_ih[g * H:(g + 1) * H] + b_hh[g * H:(g + 1) * H])
    return b


# ---------------------------------------------------------------------------
# Fused Pallas kernel
# ---------------------------------------------------------------------------

def make_rnn_kernel(T, Tp, Bp, H, Gp, num_layers, last_batch):
    """Input refs: x2d, (w_ih0, w_hh0, b0), [w_cat_l, b_l]*, w_out, b_out.
       Then out_ref, followed by scratch: xp_ref (T*Bp,Gp), last_ref (Tp,Gp)."""

    def step(gates, c):
        # gates: (Bp, Gp), gate layout [ i | f | g | o ], each H lanes wide.
        sig = jax.nn.sigmoid(gates)                      # whole-vreg EUP pass
        tg = jnp.tanh(gates)                             # whole-vreg EUP pass
        # Align f / g / o blocks with the i block at lane 0 (XLU rotations).
        f_al = pltpu.roll(sig, shift=(Gp - H) % Gp, axis=1)
        g_al = pltpu.roll(tg, shift=(Gp - 2 * H) % Gp, axis=1)
        o_al = pltpu.roll(sig, shift=(Gp - 3 * H) % Gp, axis=1)
        # Only lanes [0, H) are meaningful; other lanes hold bounded junk that
        # is killed downstream by zero weight rows.
        c_new = f_al * c + sig * g_al
        h_new = o_al * jnp.tanh(c_new)
        return h_new, c_new

    def kernel(*refs):
        x_ref = refs[0]
        w_ih0_ref, w_hh0_ref, b0_ref = refs[1], refs[2], refs[3]
        cat_refs = [(refs[4 + 2 * i], refs[5 + 2 * i])
                    for i in range(num_layers - 1)]
        base = 4 + 2 * (num_layers - 1)
        w_out_ref, b_out_ref = refs[base], refs[base + 1]
        out_ref = refs[base + 2]
        xp_ref = refs[base + 3]
        last_ref = refs[base + 4]

        if T < Tp:                                 # keep padded rows defined
            last_ref[...] = jnp.zeros_like(last_ref)

        # Layer-0 input projection for ALL timesteps in a single matmul,
        # bias folded in; staged through VMEM scratch.
        xp_ref[...] = (jnp.dot(x_ref[...], w_ih0_ref[...],
                               preferred_element_type=jnp.float32)
                       + b0_ref[...])

        w_hh0 = w_hh0_ref[...]
        cats = [(wr[...], br[...]) for wr, br in cat_refs]

        h = [jnp.zeros((Bp, Gp), jnp.float32) for _ in range(num_layers)]
        c = [jnp.zeros((Bp, Gp), jnp.float32) for _ in range(num_layers)]
        top = num_layers - 1

        for t in range(T):                               # fully unrolled
            # ---- layer 0, step t: precomputed x-proj + recurrent matmul ----
            g0 = xp_ref[pl.ds(t * Bp, Bp), :] + jnp.dot(
                h[0], w_hh0, preferred_element_type=jnp.float32)
            h[0], c[0] = step(g0, c[0])
            # ---- layers >= 1, step t: ONE matmul on [h_below_t, h_self_{t-1}]
            for l in range(1, num_layers):
                w_cat, b_l = cats[l - 1]
                lhs = jnp.concatenate([h[l - 1], h[l]], axis=1)   # (Bp, 2*Gp)
                gl = (jnp.dot(lhs, w_cat, preferred_element_type=jnp.float32)
                      + b_l)
                h[l], c[l] = step(gl, c[l])
            # r_out[:, -1, :] semantics: batch row `last_batch` of the top layer.
            last_ref[pl.ds(t, 1), :] = h[top][last_batch:last_batch + 1, :]

        # Lane-dense output projection over all T rows at once.
        out_ref[...] = (jnp.dot(last_ref[...], w_out_ref[...],
                                preferred_element_type=jnp.float32)
                        + b_out_ref[...])

    return kernel


# ---------------------------------------------------------------------------
# Wrapper
# ---------------------------------------------------------------------------

def rnn_forward(x, params):
    T, B, I = x.shape
    H = params["lstm"][0][1].shape[1]
    O = params["w_out"].shape[0]
    num_layers = len(params["lstm"])

    Bp = _round_up(B, 8)            # sublane-dense batch
    Ip = _round_up(I, 128)          # lane-dense input features
    Gp = _round_up(4 * H, 128)      # all four gates in one lane block
    Op = _round_up(O, 128)          # lane-dense output
    Tp = _round_up(T, 8)

    x_p = jnp.zeros((T, Bp, Ip), jnp.float32).at[:, :B, :I].set(x)
    x_p = x_p.reshape(T * Bp, Ip)   # kernel consumes a 2-D (T*Bp, Ip) slab

    w_ih0, w_hh0, b_ih0, b_hh0 = params["lstm"][0]
    args = [x_p,
            _pack_w(w_ih0, Ip, H, Gp),
            _pack_w(w_hh0, Gp, H, Gp),
            _pack_b(b_ih0, b_hh0, H, Gp)]
    # Layers >= 1: stack [W_ih ; W_hh] along the contraction dim so the
    # per-step work is one matmul on the concatenated [h_below, h_self].
    for (w_ih, w_hh, b_ih, b_hh) in params["lstm"][1:]:
        w_cat = jnp.concatenate([_pack_w(w_ih, Gp, H, Gp),
                                 _pack_w(w_hh, Gp, H, Gp)], axis=0)
        args += [w_cat, _pack_b(b_ih, b_hh, H, Gp)]

    w_out_p = jnp.zeros((Gp, Op), jnp.float32).at[:H, :O].set(params["w_out"].T)
    b_out_p = jnp.zeros((1, Op), jnp.float32).at[0, :O].set(params["b_out"])
    args += [w_out_p, b_out_p]

    kernel = make_rnn_kernel(T=T, Tp=Tp, Bp=Bp, H=H, Gp=Gp,
                             num_layers=num_layers, last_batch=B - 1)

    in_specs = [pl.BlockSpec(a.shape, _zero_map(a.ndim)) for a in args]

    out = pl.pallas_call(
        kernel,
        out_shape=jax.ShapeDtypeStruct((Tp, Op), jnp.float32),
        grid=(1,),
        in_specs=in_specs,
        out_specs=pl.BlockSpec((Tp, Op), _zero_map(2)),
        scratch_shapes=[pltpu.VMEM((T * Bp, Gp), jnp.float32),   # xp staging
                        pltpu.VMEM((Tp, Gp), jnp.float32)],      # last-batch h
        compiler_params=pltpu.CompilerParams(
            dimension_semantics=("arbitrary",),
            vmem_limit_bytes=32 * 1024 * 1024),
    )(*args)
    return out[:T, :O]


# ---------------------------------------------------------------------------
# Deterministic parameter init (PyTorch-style uniform(-1/sqrt(H), 1/sqrt(H)))
# ---------------------------------------------------------------------------

def init_params(key, size_list):
    input_size, hidden = size_list[0], size_list[1]
    num_layers = len(size_list) - 2
    bound = 1.0 / np.sqrt(hidden)
    lstm = []
    for layer in range(num_layers):
        in_sz = input_size if layer == 0 else hidden
        key, k1, k2, k3, k4 = jax.random.split(key, 5)
        w_ih = jax.random.uniform(k1, (4 * hidden, in_sz), jnp.float32, -bound, bound)
        w_hh = jax.random.uniform(k2, (4 * hidden, hidden), jnp.float32, -bound, bound)
        b_ih = jax.random.uniform(k3, (4 * hidden,), jnp.float32, -bound, bound)
        b_hh = jax.random.uniform(k4, (4 * hidden,), jnp.float32, -bound, bound)
        lstm.append((w_ih, w_hh, b_ih, b_hh))
    fan_in = size_list[-2]
    lb = 1.0 / np.sqrt(fan_in)
    key, k1, k2 = jax.random.split(key, 3)
    w_out = jax.random.uniform(k1, (size_list[-1], fan_in), jnp.float32, -lb, lb)
    b_out = jax.random.uniform(k2, (size_list[-1],), jnp.float32, -lb, lb)
    return {"lstm": lstm, "w_out": w_out, "b_out": b_out}


# ---------------------------------------------------------------------------
# Pure-JAX reference (mirrors torch.nn.LSTM math) for the correctness check
# ---------------------------------------------------------------------------

def rnn_reference(x, params):
    hp = jax.lax.Precision.HIGHEST
    r = x
    for (w_ih, w_hh, b_ih, b_hh) in params["lstm"]:
        H = w_hh.shape[1]
        T, B, _ = r.shape
        h = jnp.zeros((B, H), jnp.float32)
        c = jnp.zeros((B, H), jnp.float32)
        outs = []
        for t in range(T):
            gates = (jnp.dot(r[t], w_ih.T, precision=hp)
                     + jnp.dot(h, w_hh.T, precision=hp) + b_ih + b_hh)
            i = jax.nn.sigmoid(gates[:, 0 * H:1 * H])
            f = jax.nn.sigmoid(gates[:, 1 * H:2 * H])
            g = jnp.tanh(gates[:, 2 * H:3 * H])
            o = jax.nn.sigmoid(gates[:, 3 * H:4 * H])
            c = f * c + i * g
            h = o * jnp.tanh(c)
            outs.append(h)
        r = jnp.stack(outs, axis=0)
    last = r[:, -1, :]
    return jnp.dot(last, params["w_out"].T, precision=hp) + params["b_out"]


# ---------------------------------------------------------------------------

if __name__ == "__main__":
    size_list = [16, 32, 32, 8]     # input=16, hidden=32, num_layers=2, out=8
    T, B = 8, 2                     # seq_len, batch  (x is (T, B, I))

    key = jax.random.PRNGKey(0)
    key, kx = jax.random.split(key)
    x = jax.random.normal(kx, (T, B, size_list[0]), jnp.float32)
    params = init_params(key, size_list)

    out = rnn_forward(x, params)
    out = jax.block_until_ready(out)

    ref = rnn_reference(x, params)
    assert out.shape == (T, size_list[-1]), out.shape
    np.testing.assert_allclose(np.asarray(out), np.asarray(ref),
                               rtol=1e-4, atol=1e-4)
    print("KERNEL_OK")
</pallas_src>

<mosaic_0001>
module attributes {stable_mosaic.version = 11 : i64} {
  func.func @kernel(%arg0: i32, %arg1: memref<64x128xf32, #tpu.memory_space<vmem>>, %arg2: memref<128x128xf32, #tpu.memory_space<vmem>>, %arg3: memref<128x128xf32, #tpu.memory_space<vmem>>, %arg4: memref<1x128xf32, #tpu.memory_space<vmem>>, %arg5: memref<256x128xf32, #tpu.memory_space<vmem>>, %arg6: memref<1x128xf32, #tpu.memory_space<vmem>>, %arg7: memref<128x128xf32, #tpu.memory_space<vmem>>, %arg8: memref<1x128xf32, #tpu.memory_space<vmem>>, %arg9: memref<8x128xf32, #tpu.memory_space<vmem>>, %arg10: memref<64x128xf32, #tpu.memory_space<vmem>>, %arg11: memref<8x128xf32, #tpu.memory_space<vmem>>) attributes {dimension_semantics = [#tpu.dimension_semantics<arbitrary>], iteration_bounds = array<i64: 1>, scalar_prefetch = 0 : i64, scratch_operands = 2 : i64, tpu.core_type = #tpu.core_type<tc>, window_params = [{pipeline_mode = #tpu.pipeline_mode<synchronous>, transform_indices = @transform_0, window_bounds = array<i64: 64, 128>}, {pipeline_mode = #tpu.pipeline_mode<synchronous>, transform_indices = @transform_1, window_bounds = array<i64: 128, 128>}, {pipeline_mode = #tpu.pipeline_mode<synchronous>, transform_indices = @transform_2, window_bounds = array<i64: 128, 128>}, {pipeline_mode = #tpu.pipeline_mode<synchronous>, transform_indices = @transform_3, window_bounds = array<i64: 1, 128>}, {pipeline_mode = #tpu.pipeline_mode<synchronous>, transform_indices = @transform_4, window_bounds = array<i64: 256, 128>}, {pipeline_mode = #tpu.pipeline_mode<synchronous>, transform_indices = @transform_5, window_bounds = array<i64: 1, 128>}, {pipeline_mode = #tpu.pipeline_mode<synchronous>, transform_indices = @transform_6, window_bounds = array<i64: 128, 128>}, {pipeline_mode = #tpu.pipeline_mode<synchronous>, transform_indices = @transform_7, window_bounds = array<i64: 1, 128>}, {pipeline_mode = #tpu.pipeline_mode<synchronous>, transform_indices = @transform_8, window_bounds = array<i64: 8, 128>}]} {
    %c0 = arith.constant 0 : index
    %c0_0 = arith.constant 0 : index
    %0 = vector.load %arg1[%c0, %c0_0] : memref<64x128xf32, #tpu.memory_space<vmem>>, vector<64x128xf32>
    %c0_1 = arith.constant 0 : index
    %c0_2 = arith.constant 0 : index
    %1 = vector.load %arg2[%c0_1, %c0_2] : memref<128x128xf32, #tpu.memory_space<vmem>>, vector<128x128xf32>
    %cst = arith.constant dense<0.000000e+00> : vector<64x128xf32>
    %2 = tpu.matmul %0, %1, %cst {dimension_numbers = #tpu.dot_dimension_numbers<[1], [0], [0], [1], [0, 0, 1, 1], [], []>} : vector<64x128xf32>, vector<128x128xf32>, vector<64x128xf32> -> vector<64x128xf32>
    %c0_3 = arith.constant 0 : index
    %c0_4 = arith.constant 0 : index
    %3 = vector.load %arg4[%c0_3, %c0_4] : memref<1x128xf32, #tpu.memory_space<vmem>>, vector<1x128xf32>
    %4 = vector.broadcast %3 : vector<1x128xf32> to vector<64x128xf32>
    %5 = arith.addf %2, %4 : vector<64x128xf32>
    %c0_5 = arith.constant 0 : index
    %c0_6 = arith.constant 0 : index
    %6 = vector.load %arg10[%c0_5, %c0_6] : memref<64x128xf32, #tpu.memory_space<vmem>>, vector<64x128xf32>
    tpu.vector_store %arg10[%c0_5, %c0_6], %5 {strides = array<i32>} : memref<64x128xf32, #tpu.memory_space<vmem>>, vector<64x128xf32>,
    %c0_7 = arith.constant 0 : index
    %c0_8 = arith.constant 0 : index
    %7 = vector.load %arg3[%c0_7, %c0_8] : memref<128x128xf32, #tpu.memory_space<vmem>>, vector<128x128xf32>
    %c0_9 = arith.constant 0 : index
    %c0_10 = arith.constant 0 : index
    %8 = vector.load %arg5[%c0_9, %c0_10] : memref<256x128xf32, #tpu.memory_space<vmem>>, vector<256x128xf32>
    %c0_11 = arith.constant 0 : index
    %c0_12 = arith.constant 0 : index
    %9 = vector.load %arg6[%c0_11, %c0_12] : memref<1x128xf32, #tpu.memory_space<vmem>>, vector<1x128xf32>
    %cst_13 = arith.constant 0.000000e+00 : f32
    %10 = vector.broadcast %cst_13 : f32 to vector<8x128xf32>
    %cst_14 = arith.constant 0.000000e+00 : f32
    %11 = vector.broadcast %cst_14 : f32 to vector<8x128xf32>
    %cst_15 = arith.constant 0.000000e+00 : f32
    %12 = vector.broadcast %cst_15 : f32 to vector<8x128xf32>
    %cst_16 = arith.constant 0.000000e+00 : f32
    %13 = vector.broadcast %cst_16 : f32 to vector<8x128xf32>
    %c0_17 = arith.constant 0 : index
    %c0_18 = arith.constant 0 : index
    %14 = vector.load %arg10[%c0_17, %c0_18] : memref<64x128xf32, #tpu.memory_space<vmem>>, vector<8x128xf32>
    %cst_19 = arith.constant dense<0.000000e+00> : vector<8x128xf32>
    %15 = tpu.matmul %10, %7, %cst_19 {dimension_numbers = #tpu.dot_dimension_numbers<[1], [0], [0], [1], [0, 0, 1, 1], [], []>} : vector<8x128xf32>, vector<128x128xf32>, vector<8x128xf32> -> vector<8x128xf32>
    %16 = arith.addf %14, %15 : vector<8x128xf32>
    %17 = arith.negf %16 : vector<8x128xf32>
    %18 = math.exp %17 : vector<8x128xf32>
    %cst_20 = arith.constant 1.000000e+00 : f32
    %19 = vector.broadcast %cst_20 : f32 to vector<8x128xf32>
    %20 = arith.addf %19, %18 : vector<8x128xf32>
    %21 = arith.divf %19, %20 : vector<8x128xf32>
    %22 = math.tanh %16 : vector<8x128xf32>
    %c96_i32 = arith.constant 96 : i32
    %23 = tpu.dynamic_rotate %21 by %c96_i32 dim 1 : vector<8x128xf32>, i32 -> vector<8x128xf32>
    %c64_i32 = arith.constant 64 : i32
    %24 = tpu.dynamic_rotate %22 by %c64_i32 dim 1 : vector<8x128xf32>, i32 -> vector<8x128xf32>
    %c32_i32 = arith.constant 32 : i32
    %25 = tpu.dynamic_rotate %21 by %c32_i32 dim 1 : vector<8x128xf32>, i32 -> vector<8x128xf32>
    %26 = arith.mulf %23, %12 : vector<8x128xf32>
    %27 = arith.mulf %21, %24 : vector<8x128xf32>
    %28 = arith.addf %26, %27 : vector<8x128xf32>
    %29 = math.tanh %28 : vector<8x128xf32>
    %30 = arith.mulf %25, %29 : vector<8x128xf32>
    %31 = tpu.concatenate %30, %11 in 1 : vector<8x128xf32>, vector<8x128xf32> -> vector<8x256xf32>
    %cst_21 = arith.constant dense<0.000000e+00> : vector<8x128xf32>
    %32 = tpu.matmul %31, %8, %cst_21 {dimension_numbers = #tpu.dot_dimension_numbers<[1], [0], [0], [1], [0, 0, 1, 1], [], []>} : vector<8x256xf32>, vector<256x128xf32>, vector<8x128xf32> -> vector<8x128xf32>
    %33 = vector.broadcast %9 : vector<1x128xf32> to vector<8x128xf32>
    %34 = arith.addf %32, %33 : vector<8x128xf32>
    %35 = arith.negf %34 : vector<8x128xf32>
    %36 = math.exp %35 : vector<8x128xf32>
    %cst_22 = arith.constant 1.000000e+00 : f32
    %37 = vector.broadcast %cst_22 : f32 to vector<8x128xf32>
    %38 = arith.addf %37, %36 : vector<8x128xf32>
    %39 = arith.divf %37, %38 : vector<8x128xf32>
    %40 = math.tanh %34 : vector<8x128xf32>
    %c96_i32_23 = arith.constant 96 : i32
    %41 = tpu.dynamic_rotate %39 by %c96_i32_23 dim 1 : vector<8x128xf32>, i32 -> vector<8x128xf32>
    %c64_i32_24 = arith.constant 64 : i32
    %42 = tpu.dynamic_rotate %40 by %c64_i32_24 dim 1 : vector<8x128xf32>, i32 -> vector<8x128xf32>
    %c32_i32_25 = arith.constant 32 : i32
    %43 = tpu.dynamic_rotate %39 by %c32_i32_25 dim 1 : vector<8x128xf32>, i32 -> vector<8x128xf32>
    %44 = arith.mulf %41, %13 : vector<8x128xf32>
    %45 = arith.mulf %39, %42 : vector<8x128xf32>
    %46 = arith.addf %44, %45 : vector<8x128xf32>
    %47 = math.tanh %46 : vector<8x128xf32>
    %48 = arith.mulf %43, %47 : vector<8x128xf32>
    %49 = vector.extract_strided_slice %48 {offsets = [1, 0], sizes = [1, 128], strides = [1, 1]} : vector<8x128xf32> to vector<1x128xf32>
    %c0_26 = arith.constant 0 : index
    %c0_27 = arith.constant 0 : index
    %50 = vector.load %arg11[%c0_26, %c0_27] : memref<8x128xf32, #tpu.memory_space<vmem>>, vector<1x128xf32>
    tpu.vector_store %arg11[%c0_26, %c0_27], %49 {strides = array<i32>} : memref<8x128xf32, #tpu.memory_space<vmem>>, vector<1x128xf32>,
    %c8 = arith.constant 8 : index
    %c0_28 = arith.constant 0 : index
    %51 = vector.load %arg10[%c8, %c0_28] : memref<64x128xf32, #tpu.memory_space<vmem>>, vector<8x128xf32>
    %cst_29 = arith.constant dense<0.000000e+00> : vector<8x128xf32>
    %52 = tpu.matmul %30, %7, %cst_29 {dimension_numbers = #tpu.dot_dimension_numbers<[1], [0], [0], [1], [0, 0, 1, 1], [], []>} : vector<8x128xf32>, vector<128x128xf32>, vector<8x128xf32> -> vector<8x128xf32>
    %53 = arith.addf %51, %52 : vector<8x128xf32>
    %54 = arith.negf %53 : vector<8x128xf32>
    %55 = math.exp %54 : vector<8x128xf32>
    %cst_30 = arith.constant 1.000000e+00 : f32
    %56 = vector.broadcast %cst_30 : f32 to vector<8x128xf32>
    %57 = arith.addf %56, %55 : vector<8x128xf32>
    %58 = arith.divf %56, %57 : vector<8x128xf32>
    %59 = math.tanh %53 : vector<8x128xf32>
    %c96_i32_31 = arith.constant 96 : i32
    %60 = tpu.dynamic_rotate %58 by %c96_i32_31 dim 1 : vector<8x128xf32>, i32 -> vector<8x128xf32>
    %c64_i32_32 = arith.constant 64 : i32
    %61 = tpu.dynamic_rotate %59 by %c64_i32_32 dim 1 : vector<8x128xf32>, i32 -> vector<8x128xf32>
    %c32_i32_33 = arith.constant 32 : i32
    %62 = tpu.dynamic_rotate %58 by %c32_i32_33 dim 1 : vector<8x128xf32>, i32 -> vector<8x128xf32>
    %63 = arith.mulf %60, %28 : vector<8x128xf32>
    %64 = arith.mulf %58, %61 : vector<8x128xf32>
    %65 = arith.addf %63, %64 : vector<8x128xf32>
    %66 = math.tanh %65 : vector<8x128xf32>
    %67 = arith.mulf %62, %66 : vector<8x128xf32>
    %68 = tpu.concatenate %67, %48 in 1 : vector<8x128xf32>, vector<8x128xf32> -> vector<8x256xf32>
    %cst_34 = arith.constant dense<0.000000e+00> : vector<8x128xf32>
    %69 = tpu.matmul %68, %8, %cst_34 {dimension_numbers = #tpu.dot_dimension_numbers<[1], [0], [0], [1], [0, 0, 1, 1], [], []>} : vector<8x256xf32>, vector<256x128xf32>, vector<8x128xf32> -> vector<8x128xf32>
    %70 = vector.broadcast %9 : vector<1x128xf32> to vector<8x128xf32>
    %71 = arith.addf %69, %70 : vector<8x128xf32>
    %72 = arith.negf %71 : vector<8x128xf32>
    %73 = math.exp %72 : vector<8x128xf32>
    %cst_35 = arith.constant 1.000000e+00 : f32
    %74 = vector.broadcast %cst_35 : f32 to vector<8x128xf32>
    %75 = arith.addf %74, %73 : vector<8x128xf32>
    %76 = arith.divf %74, %75 : vector<8x128xf32>
    %77 = math.tanh %71 : vector<8x128xf32>
    %c96_i32_36 = arith.constant 96 : i32
    %78 = tpu.dynamic_rotate %76 by %c96_i32_36 dim 1 : vector<8x128xf32>, i32 -> vector<8x128xf32>
    %c64_i32_37 = arith.constant 64 : i32
    %79 = tpu.dynamic_rotate %77 by %c64_i32_37 dim 1 : vector<8x128xf32>, i32 -> vector<8x128xf32>
    %c32_i32_38 = arith.constant 32 : i32
    %80 = tpu.dynamic_rotate %76 by %c32_i32_38 dim 1 : vector<8x128xf32>, i32 -> vector<8x128xf32>
    %81 = arith.mulf %78, %46 : vector<8x128xf32>
    %82 = arith.mulf %76, %79 : vector<8x128xf32>
    %83 = arith.addf %81, %82 : vector<8x128xf32>
    %84 = math.tanh %83 : vector<8x128xf32>
    %85 = arith.mulf %80, %84 : vector<8x128xf32>
    %86 = vector.extract_strided_slice %85 {offsets = [1, 0], sizes = [1, 128], strides = [1, 1]} : vector<8x128xf32> to vector<1x128xf32>
    %c1 = arith.constant 1 : index
    %c0_39 = arith.constant 0 : index
    %87 = vector.load %arg11[%c1, %c0_39] : memref<8x128xf32, #tpu.memory_space<vmem>>, vector<1x128xf32>
    tpu.vector_store %arg11[%c1, %c0_39], %86 {strides = array<i32>} : memref<8x128xf32, #tpu.memory_space<vmem>>, vector<1x128xf32>,
    %c16 = arith.constant 16 : index
    %c0_40 = arith.constant 0 : index
    %88 = vector.load %arg10[%c16, %c0_40] : memref<64x128xf32, #tpu.memory_space<vmem>>, vector<8x128xf32>
    %cst_41 = arith.constant dense<0.000000e+00> : vector<8x128xf32>
    %89 = tpu.matmul %67, %7, %cst_41 {dimension_numbers = #tpu.dot_dimension_numbers<[1], [0], [0], [1], [0, 0, 1, 1], [], []>} : vector<8x128xf32>, vector<128x128xf32>, vector<8x128xf32> -> vector<8x128xf32>
    %90 = arith.addf %88, %89 : vector<8x128xf32>
    %91 = arith.negf %90 : vector<8x128xf32>
    %92 = math.exp %91 : vector<8x128xf32>
    %cst_42 = arith.constant 1.000000e+00 : f32
    %93 = vector.broadcast %cst_42 : f32 to vector<8x128xf32>
    %94 = arith.addf %93, %92 : vector<8x128xf32>
    %95 = arith.divf %93, %94 : vector<8x128xf32>
    %96 = math.tanh %90 : vector<8x128xf32>
    %c96_i32_43 = arith.constant 96 : i32
    %97 = tpu.dynamic_rotate %95 by %c96_i32_43 dim 1 : vector<8x128xf32>, i32 -> vector<8x128xf32>
    %c64_i32_44 = arith.constant 64 : i32
    %98 = tpu.dynamic_rotate %96 by %c64_i32_44 dim 1 : vector<8x128xf32>, i32 -> vector<8x128xf32>
    %c32_i32_45 = arith.constant 32 : i32
    %99 = tpu.dynamic_rotate %95 by %c32_i32_45 dim 1 : vector<8x128xf32>, i32 -> vector<8x128xf32>
    %100 = arith.mulf %97, %65 : vector<8x128xf32>
    %101 = arith.mulf %95, %98 : vector<8x128xf32>
    %102 = arith.addf %100, %101 : vector<8x128xf32>
    %103 = math.tanh %102 : vector<8x128xf32>
    %104 = arith.mulf %99, %103 : vector<8x128xf32>
    %105 = tpu.concatenate %104, %85 in 1 : vector<8x128xf32>, vector<8x128xf32> -> vector<8x256xf32>
    %cst_46 = arith.constant dense<0.000000e+00> : vector<8x128xf32>
    %106 = tpu.matmul %105, %8, %cst_46 {dimension_numbers = #tpu.dot_dimension_numbers<[1], [0], [0], [1], [0, 0, 1, 1], [], []>} : vector<8x256xf32>, vector<256x128xf32>, vector<8x128xf32> -> vector<8x128xf32>
    %107 = vector.broadcast %9 : vector<1x128xf32> to vector<8x128xf32>
    %108 = arith.addf %106, %107 : vector<8x128xf32>
    %109 = arith.negf %108 : vector<8x128xf32>
    %110 = math.exp %109 : vector<8x128xf32>
    %cst_47 = arith.constant 1.000000e+00 : f32
    %111 = vector.broadcast %cst_47 : f32 to vector<8x128xf32>
    %112 = arith.addf %111, %110 : vector<8x128xf32>
    %113 = arith.divf %111, %112 : vector<8x128xf32>
    %114 = math.tanh %108 : vector<8x128xf32>
    %c96_i32_48 = arith.constant 96 : i32
    %115 = tpu.dynamic_rotate %113 by %c96_i32_48 dim 1 : vector<8x128xf32>, i32 -> vector<8x128xf32>
    %c64_i32_49 = arith.constant 64 : i32
    %116 = tpu.dynamic_rotate %114 by %c64_i32_49 dim 1 : vector<8x128xf32>, i32 -> vector<8x128xf32>
    %c32_i32_50 = arith.constant 32 : i32
    %117 = tpu.dynamic_rotate %113 by %c32_i32_50 dim 1 : vector<8x128xf32>, i32 -> vector<8x128xf32>
    %118 = arith.mulf %115, %83 : vector<8x128xf32>
    %119 = arith.mulf %113, %116 : vector<8x128xf32>
    %120 = arith.addf %118, %119 : vector<8x128xf32>
    %121 = math.tanh %120 : vector<8x128xf32>
    %122 = arith.mulf %117, %121 : vector<8x128xf32>
    %123 = vector.extract_strided_slice %122 {offsets = [1, 0], sizes = [1, 128], strides = [1, 1]} : vector<8x128xf32> to vector<1x128xf32>
    %c2 = arith.constant 2 : index
    %c0_51 = arith.constant 0 : index
    %124 = vector.load %arg11[%c2, %c0_51] : memref<8x128xf32, #tpu.memory_space<vmem>>, vector<1x128xf32>
    tpu.vector_store %arg11[%c2, %c0_51], %123 {strides = array<i32>} : memref<8x128xf32, #tpu.memory_space<vmem>>, vector<1x128xf32>,
    %c24 = arith.constant 24 : index
    %c0_52 = arith.constant 0 : index
    %125 = vector.load %arg10[%c24, %c0_52] : memref<64x128xf32, #tpu.memory_space<vmem>>, vector<8x128xf32>
    %cst_53 = arith.constant dense<0.000000e+00> : vector<8x128xf32>
    %126 = tpu.matmul %104, %7, %cst_53 {dimension_numbers = #tpu.dot_dimension_numbers<[1], [0], [0], [1], [0, 0, 1, 1], [], []>} : vector<8x128xf32>, vector<128x128xf32>, vector<8x128xf32> -> vector<8x128xf32>
    %127 = arith.addf %125, %126 : vector<8x128xf32>
    %128 = arith.negf %127 : vector<8x128xf32>
    %129 = math.exp %128 : vector<8x128xf32>
    %cst_54 = arith.constant 1.000000e+00 : f32
    %130 = vector.broadcast %cst_54 : f32 to vector<8x128xf32>
    %131 = arith.addf %130, %129 : vector<8x128xf32>
    %132 = arith.divf %130, %131 : vector<8x128xf32>
    %133 = math.tanh %127 : vector<8x128xf32>
    %c96_i32_55 = arith.constant 96 : i32
    %134 = tpu.dynamic_rotate %132 by %c96_i32_55 dim 1 : vector<8x128xf32>, i32 -> vector<8x128xf32>
    %c64_i32_56 = arith.constant 64 : i32
    %135 = tpu.dynamic_rotate %133 by %c64_i32_56 dim 1 : vector<8x128xf32>, i32 -> vector<8x128xf32>
    %c32_i32_57 = arith.constant 32 : i32
    %136 = tpu.dynamic_rotate %132 by %c32_i32_57 dim 1 : vector<8x128xf32>, i32 -> vector<8x128xf32>
    %137 = arith.mulf %134, %102 : vector<8x128xf32>
    %138 = arith.mulf %132, %135 : vector<8x128xf32>
    %139 = arith.addf %137, %138 : vector<8x128xf32>
    %140 = math.tanh %139 : vector<8x128xf32>
    %141 = arith.mulf %136, %140 : vector<8x128xf32>
    %142 = tpu.concatenate %141, %122 in 1 : vector<8x128xf32>, vector<8x128xf32> -> vector<8x256xf32>
    %cst_58 = arith.constant dense<0.000000e+00> : vector<8x128xf32>
    %143 = tpu.matmul %142, %8, %cst_58 {dimension_numbers = #tpu.dot_dimension_numbers<[1], [0], [0], [1], [0, 0, 1, 1], [], []>} : vector<8x256xf32>, vector<256x128xf32>, vector<8x128xf32> -> vector<8x128xf32>
    %144 = vector.broadcast %9 : vector<1x128xf32> to vector<8x128xf32>
    %145 = arith.addf %143, %144 : vector<8x128xf32>
    %146 = arith.negf %145 : vector<8x128xf32>
    %147 = math.exp %146 : vector<8x128xf32>
    %cst_59 = arith.constant 1.000000e+00 : f32
    %148 = vector.broadcast %cst_59 : f32 to vector<8x128xf32>
    %149 = arith.addf %148, %147 : vector<8x128xf32>
    %150 = arith.divf %148, %149 : vector<8x128xf32>
    %151 = math.tanh %145 : vector<8x128xf32>
    %c96_i32_60 = arith.constant 96 : i32
    %152 = tpu.dynamic_rotate %150 by %c96_i32_60 dim 1 : vector<8x128xf32>, i32 -> vector<8x128xf32>
    %c64_i32_61 = arith.constant 64 : i32
    %153 = tpu.dynamic_rotate %151 by %c64_i32_61 dim 1 : vector<8x128xf32>, i32 -> vector<8x128xf32>
    %c32_i32_62 = arith.constant 32 : i32
    %154 = tpu.dynamic_rotate %150 by %c32_i32_62 dim 1 : vector<8x128xf32>, i32 -> vector<8x128xf32>
    %155 = arith.mulf %152, %120 : vector<8x128xf32>
    %156 = arith.mulf %150, %153 : vector<8x128xf32>
    %157 = arith.addf %155, %156 : vector<8x128xf32>
    %158 = math.tanh %157 : vector<8x128xf32>
    %159 = arith.mulf %154, %158 : vector<8x128xf32>
    %160 = vector.extract_strided_slice %159 {offsets = [1, 0], sizes = [1, 128], strides = [1, 1]} : vector<8x128xf32> to vector<1x128xf32>
    %c3 = arith.constant 3 : index
    %c0_63 = arith.constant 0 : index
    %161 = vector.load %arg11[%c3, %c0_63] : memref<8x128xf32, #tpu.memory_space<vmem>>, vector<1x128xf32>
    tpu.vector_store %arg11[%c3, %c0_63], %160 {strides = array<i32>} : memref<8x128xf32, #tpu.memory_space<vmem>>, vector<1x128xf32>,
    %c32 = arith.constant 32 : index
    %c0_64 = arith.constant 0 : index
    %162 = vector.load %arg10[%c32, %c0_64] : memref<64x128xf32, #tpu.memory_space<vmem>>, vector<8x128xf32>
    %cst_65 = arith.constant dense<0.000000e+00> : vector<8x128xf32>
    %163 = tpu.matmul %141, %7, %cst_65 {dimension_numbers = #tpu.dot_dimension_numbers<[1], [0], [0], [1], [0, 0, 1, 1], [], []>} : vector<8x128xf32>, vector<128x128xf32>, vector<8x128xf32> -> vector<8x128xf32>
    %164 = arith.addf %162, %163 : vector<8x128xf32>
    %165 = arith.negf %164 : vector<8x128xf32>
    %166 = math.exp %165 : vector<8x128xf32>
    %cst_66 = arith.constant 1.000000e+00 : f32
    %167 = vector.broadcast %cst_66 : f32 to vector<8x128xf32>
    %168 = arith.addf %167, %166 : vector<8x128xf32>
    %169 = arith.divf %167, %168 : vector<8x128xf32>
    %170 = math.tanh %164 : vector<8x128xf32>
    %c96_i32_67 = arith.constant 96 : i32
    %171 = tpu.dynamic_rotate %169 by %c96_i32_67 dim 1 : vector<8x128xf32>, i32 -> vector<8x128xf32>
    %c64_i32_68 = arith.constant 64 : i32
    %172 = tpu.dynamic_rotate %170 by %c64_i32_68 dim 1 : vector<8x128xf32>, i32 -> vector<8x128xf32>
    %c32_i32_69 = arith.constant 32 : i32
    %173 = tpu.dynamic_rotate %169 by %c32_i32_69 dim 1 : vector<8x128xf32>, i32 -> vector<8x128xf32>
    %174 = arith.mulf %171, %139 : vector<8x128xf32>
    %175 = arith.mulf %169, %172 : vector<8x128xf32>
    %176 = arith.addf %174, %175 : vector<8x128xf32>
    %177 = math.tanh %176 : vector<8x128xf32>
    %178 = arith.mulf %173, %177 : vector<8x128xf32>
    %179 = tpu.concatenate %178, %159 in 1 : vector<8x128xf32>, vector<8x128xf32> -> vector<8x256xf32>
    %cst_70 = arith.constant dense<0.000000e+00> : vector<8x128xf32>
    %180 = tpu.matmul %179, %8, %cst_70 {dimension_numbers = #tpu.dot_dimension_numbers<[1], [0], [0], [1], [0, 0, 1, 1], [], []>} : vector<8x256xf32>, vector<256x128xf32>, vector<8x128xf32> -> vector<8x128xf32>
    %181 = vector.broadcast %9 : vector<1x128xf32> to vector<8x128xf32>
    %182 = arith.addf %180, %181 : vector<8x128xf32>
    %183 = arith.negf %182 : vector<8x128xf32>
    %184 = math.exp %183 : vector<8x128xf32>
    %cst_71 = arith.constant 1.000000e+00 : f32
    %185 = vector.broadcast %cst_71 : f32 to vector<8x128xf32>
    %186 = arith.addf %185, %184 : vector<8x128xf32>
    %187 = arith.divf %185, %186 : vector<8x128xf32>
    %188 = math.tanh %182 : vector<8x128xf32>
    %c96_i32_72 = arith.constant 96 : i32
    %189 = tpu.dynamic_rotate %187 by %c96_i32_72 dim 1 : vector<8x128xf32>, i32 -> vector<8x128xf32>
    %c64_i32_73 = arith.constant 64 : i32
    %190 = tpu.dynamic_rotate %188 by %c64_i32_73 dim 1 : vector<8x128xf32>, i32 -> vector<8x128xf32>
    %c32_i32_74 = arith.constant 32 : i32
    %191 = tpu.dynamic_rotate %187 by %c32_i32_74 dim 1 : vector<8x128xf32>, i32 -> vector<8x128xf32>
    %192 = arith.mulf %189, %157 : vector<8x128xf32>
    %193 = arith.mulf %187, %190 : vector<8x128xf32>
    %194 = arith.addf %192, %193 : vector<8x128xf32>
    %195 = math.tanh %194 : vector<8x128xf32>
    %196 = arith.mulf %191, %195 : vector<8x128xf32>
    %197 = vector.extract_strided_slice %196 {offsets = [1, 0], sizes = [1, 128], strides = [1, 1]} : vector<8x128xf32> to vector<1x128xf32>
    %c4 = arith.constant 4 : index
    %c0_75 = arith.constant 0 : index
    %198 = vector.load %arg11[%c4, %c0_75] : memref<8x128xf32, #tpu.memory_space<vmem>>, vector<1x128xf32>
    tpu.vector_store %arg11[%c4, %c0_75], %197 {strides = array<i32>} : memref<8x128xf32, #tpu.memory_space<vmem>>, vector<1x128xf32>,
    %c40 = arith.constant 40 : index
    %c0_76 = arith.constant 0 : index
    %199 = vector.load %arg10[%c40, %c0_76] : memref<64x128xf32, #tpu.memory_space<vmem>>, vector<8x128xf32>
    %cst_77 = arith.constant dense<0.000000e+00> : vector<8x128xf32>
    %200 = tpu.matmul %178, %7, %cst_77 {dimension_numbers = #tpu.dot_dimension_numbers<[1], [0], [0], [1], [0, 0, 1, 1], [], []>} : vector<8x128xf32>, vector<128x128xf32>, vector<8x128xf32> -> vector<8x128xf32>
    %201 = arith.addf %199, %200 : vector<8x128xf32>
    %202 = arith.negf %201 : vector<8x128xf32>
    %203 = math.exp %202 : vector<8x128xf32>
    %cst_78 = arith.constant 1.000000e+00 : f32
    %204 = vector.broadcast %cst_78 : f32 to vector<8x128xf32>
    %205 = arith.addf %204, %203 : vector<8x128xf32>
    %206 = arith.divf %204, %205 : vector<8x128xf32>
    %207 = math.tanh %201 : vector<8x128xf32>
    %c96_i32_79 = arith.constant 96 : i32
    %208 = tpu.dynamic_rotate %206 by %c96_i32_79 dim 1 : vector<8x128xf32>, i32 -> vector<8x128xf32>
    %c64_i32_80 = arith.constant 64 : i32
    %209 = tpu.dynamic_rotate %207 by %c64_i32_80 dim 1 : vector<8x128xf32>, i32 -> vector<8x128xf32>
    %c32_i32_81 = arith.constant 32 : i32
    %210 = tpu.dynamic_rotate %206 by %c32_i32_81 dim 1 : vector<8x128xf32>, i32 -> vector<8x128xf32>
    %211 = arith.mulf %208, %176 : vector<8x128xf32>
    %212 = arith.mulf %206, %209 : vector<8x128xf32>
    %213 = arith.addf %211, %212 : vector<8x128xf32>
    %214 = math.tanh %213 : vector<8x128xf32>
    %215 = arith.mulf %210, %214 : vector<8x128xf32>
    %216 = tpu.concatenate %215, %196 in 1 : vector<8x128xf32>, vector<8x128xf32> -> vector<8x256xf32>
    %cst_82 = arith.constant dense<0.000000e+00> : vector<8x128xf32>
    %217 = tpu.matmul %216, %8, %cst_82 {dimension_numbers = #tpu.dot_dimension_numbers<[1], [0], [0], [1], [0, 0, 1, 1], [], []>} : vector<8x256xf32>, vector<256x128xf32>, vector<8x128xf32> -> vector<8x128xf32>
    %218 = vector.broadcast %9 : vector<1x128xf32> to vector<8x128xf32>
    %219 = arith.addf %217, %218 : vector<8x128xf32>
    %220 = arith.negf %219 : vector<8x128xf32>
    %221 = math.exp %220 : vector<8x128xf32>
    %cst_83 = arith.constant 1.000000e+00 : f32
    %222 = vector.broadcast %cst_83 : f32 to vector<8x128xf32>
    %223 = arith.addf %222, %221 : vector<8x128xf32>
    %224 = arith.divf %222, %223 : vector<8x128xf32>
    %225 = math.tanh %219 : vector<8x128xf32>
    %c96_i32_84 = arith.constant 96 : i32
    %226 = tpu.dynamic_rotate %224 by %c96_i32_84 dim 1 : vector<8x128xf32>, i32 -> vector<8x128xf32>
    %c64_i32_85 = arith.constant 64 : i32
    %227 = tpu.dynamic_rotate %225 by %c64_i32_85 dim 1 : vector<8x128xf32>, i32 -> vector<8x128xf32>
    %c32_i32_86 = arith.constant 32 : i32
    %228 = tpu.dynamic_rotate %224 by %c32_i32_86 dim 1 : vector<8x128xf32>, i32 -> vector<8x128xf32>
    %229 = arith.mulf %226, %194 : vector<8x128xf32>
    %230 = arith.mulf %224, %227 : vector<8x128xf32>
    %231 = arith.addf %229, %230 : vector<8x128xf32>
    %232 = math.tanh %231 : vector<8x128xf32>
    %233 = arith.mulf %228, %232 : vector<8x128xf32>
    %234 = vector.extract_strided_slice %233 {offsets = [1, 0], sizes = [1, 128], strides = [1, 1]} : vector<8x128xf32> to vector<1x128xf32>
    %c5 = arith.constant 5 : index
    %c0_87 = arith.constant 0 : index
    %235 = vector.load %arg11[%c5, %c0_87] : memref<8x128xf32, #tpu.memory_space<vmem>>, vector<1x128xf32>
    tpu.vector_store %arg11[%c5, %c0_87], %234 {strides = array<i32>} : memref<8x128xf32, #tpu.memory_space<vmem>>, vector<1x128xf32>,
    %c48 = arith.constant 48 : index
    %c0_88 = arith.constant 0 : index
    %236 = vector.load %arg10[%c48, %c0_88] : memref<64x128xf32, #tpu.memory_space<vmem>>, vector<8x128xf32>
    %cst_89 = arith.constant dense<0.000000e+00> : vector<8x128xf32>
    %237 = tpu.matmul %215, %7, %cst_89 {dimension_numbers = #tpu.dot_dimension_numbers<[1], [0], [0], [1], [0, 0, 1, 1], [], []>} : vector<8x128xf32>, vector<128x128xf32>, vector<8x128xf32> -> vector<8x128xf32>
    %238 = arith.addf %236, %237 : vector<8x128xf32>
    %239 = arith.negf %238 : vector<8x128xf32>
    %240 = math.exp %239 : vector<8x128xf32>
    %cst_90 = arith.constant 1.000000e+00 : f32
    %241 = vector.broadcast %cst_90 : f32 to vector<8x128xf32>
    %242 = arith.addf %241, %240 : vector<8x128xf32>
    %243 = arith.divf %241, %242 : vector<8x128xf32>
    %244 = math.tanh %238 : vector<8x128xf32>
    %c96_i32_91 = arith.constant 96 : i32
    %245 = tpu.dynamic_rotate %243 by %c96_i32_91 dim 1 : vector<8x128xf32>, i32 -> vector<8x128xf32>
    %c64_i32_92 = arith.constant 64 : i32
    %246 = tpu.dynamic_rotate %244 by %c64_i32_92 dim 1 : vector<8x128xf32>, i32 -> vector<8x128xf32>
    %c32_i32_93 = arith.constant 32 : i32
    %247 = tpu.dynamic_rotate %243 by %c32_i32_93 dim 1 : vector<8x128xf32>, i32 -> vector<8x128xf32>
    %248 = arith.mulf %245, %213 : vector<8x128xf32>
    %249 = arith.mulf %243, %246 : vector<8x128xf32>
    %250 = arith.addf %248, %249 : vector<8x128xf32>
    %251 = math.tanh %250 : vector<8x128xf32>
    %252 = arith.mulf %247, %251 : vector<8x128xf32>
    %253 = tpu.concatenate %252, %233 in 1 : vector<8x128xf32>, vector<8x128xf32> -> vector<8x256xf32>
    %cst_94 = arith.constant dense<0.000000e+00> : vector<8x128xf32>
    %254 = tpu.matmul %253, %8, %cst_94 {dimension_numbers = #tpu.dot_dimension_numbers<[1], [0], [0], [1], [0, 0, 1, 1], [], []>} : vector<8x256xf32>, vector<256x128xf32>, vector<8x128xf32> -> vector<8x128xf32>
    %255 = vector.broadcast %9 : vector<1x128xf32> to vector<8x128xf32>
    %256 = arith.addf %254, %255 : vector<8x128xf32>
    %257 = arith.negf %256 : vector<8x128xf32>
    %258 = math.exp %257 : vector<8x128xf32>
    %cst_95 = arith.constant 1.000000e+00 : f32
    %259 = vector.broadcast %cst_95 : f32 to vector<8x128xf32>
    %260 = arith.addf %259, %258 : vector<8x128xf32>
    %261 = arith.divf %259, %260 : vector<8x128xf32>
    %262 = math.tanh %256 : vector<8x128xf32>
    %c96_i32_96 = arith.constant 96 : i32
    %263 = tpu.dynamic_rotate %261 by %c96_i32_96 dim 1 : vector<8x128xf32>, i32 -> vector<8x128xf32>
    %c64_i32_97 = arith.constant 64 : i32
    %264 = tpu.dynamic_rotate %262 by %c64_i32_97 dim 1 : vector<8x128xf32>, i32 -> vector<8x128xf32>
    %c32_i32_98 = arith.constant 32 : i32
    %265 = tpu.dynamic_rotate %261 by %c32_i32_98 dim 1 : vector<8x128xf32>, i32 -> vector<8x128xf32>
    %266 = arith.mulf %263, %231 : vector<8x128xf32>
    %267 = arith.mulf %261, %264 : vector<8x128xf32>
    %268 = arith.addf %266, %267 : vector<8x128xf32>
    %269 = math.tanh %268 : vector<8x128xf32>
    %270 = arith.mulf %265, %269 : vector<8x128xf32>
    %271 = vector.extract_strided_slice %270 {offsets = [1, 0], sizes = [1, 128], strides = [1, 1]} : vector<8x128xf32> to vector<1x128xf32>
    %c6 = arith.constant 6 : index
    %c0_99 = arith.constant 0 : index
    %272 = vector.load %arg11[%c6, %c0_99] : memref<8x128xf32, #tpu.memory_space<vmem>>, vector<1x128xf32>
    tpu.vector_store %arg11[%c6, %c0_99], %271 {strides = array<i32>} : memref<8x128xf32, #tpu.memory_space<vmem>>, vector<1x128xf32>,
    %c56 = arith.constant 56 : index
    %c0_100 = arith.constant 0 : index
    %273 = vector.load %arg10[%c56, %c0_100] : memref<64x128xf32, #tpu.memory_space<vmem>>, vector<8x128xf32>
    %cst_101 = arith.constant dense<0.000000e+00> : vector<8x128xf32>
    %274 = tpu.matmul %252, %7, %cst_101 {dimension_numbers = #tpu.dot_dimension_numbers<[1], [0], [0], [1], [0, 0, 1, 1], [], []>} : vector<8x128xf32>, vector<128x128xf32>, vector<8x128xf32> -> vector<8x128xf32>
    %275 = arith.addf %273, %274 : vector<8x128xf32>
    %276 = arith.negf %275 : vector<8x128xf32>
    %277 = math.exp %276 : vector<8x128xf32>
    %cst_102 = arith.constant 1.000000e+00 : f32
    %278 = vector.broadcast %cst_102 : f32 to vector<8x128xf32>
    %279 = arith.addf %278, %277 : vector<8x128xf32>
    %280 = arith.divf %278, %279 : vector<8x128xf32>
    %281 = math.tanh %275 : vector<8x128xf32>
    %c96_i32_103 = arith.constant 96 : i32
    %282 = tpu.dynamic_rotate %280 by %c96_i32_103 dim 1 : vector<8x128xf32>, i32 -> vector<8x128xf32>
    %c64_i32_104 = arith.constant 64 : i32
    %283 = tpu.dynamic_rotate %281 by %c64_i32_104 dim 1 : vector<8x128xf32>, i32 -> vector<8x128xf32>
    %c32_i32_105 = arith.constant 32 : i32
    %284 = tpu.dynamic_rotate %280 by %c32_i32_105 dim 1 : vector<8x128xf32>, i32 -> vector<8x128xf32>
    %285 = arith.mulf %282, %250 : vector<8x128xf32>
    %286 = arith.mulf %280, %283 : vector<8x128xf32>
    %287 = arith.addf %285, %286 : vector<8x128xf32>
    %288 = math.tanh %287 : vector<8x128xf32>
    %289 = arith.mulf %284, %288 : vector<8x128xf32>
    %290 = tpu.concatenate %289, %270 in 1 : vector<8x128xf32>, vector<8x128xf32> -> vector<8x256xf32>
    %cst_106 = arith.constant dense<0.000000e+00> : vector<8x128xf32>
    %291 = tpu.matmul %290, %8, %cst_106 {dimension_numbers = #tpu.dot_dimension_numbers<[1], [0], [0], [1], [0, 0, 1, 1], [], []>} : vector<8x256xf32>, vector<256x128xf32>, vector<8x128xf32> -> vector<8x128xf32>
    %292 = vector.broadcast %9 : vector<1x128xf32> to vector<8x128xf32>
    %293 = arith.addf %291, %292 : vector<8x128xf32>
    %294 = arith.negf %293 : vector<8x128xf32>
    %295 = math.exp %294 : vector<8x128xf32>
    %cst_107 = arith.constant 1.000000e+00 : f32
    %296 = vector.broadcast %cst_107 : f32 to vector<8x128xf32>
    %297 = arith.addf %296, %295 : vector<8x128xf32>
    %298 = arith.divf %296, %297 : vector<8x128xf32>
    %299 = math.tanh %293 : vector<8x128xf32>
    %c96_i32_108 = arith.constant 96 : i32
    %300 = tpu.dynamic_rotate %298 by %c96_i32_108 dim 1 : vector<8x128xf32>, i32 -> vector<8x128xf32>
    %c64_i32_109 = arith.constant 64 : i32
    %301 = tpu.dynamic_rotate %299 by %c64_i32_109 dim 1 : vector<8x128xf32>, i32 -> vector<8x128xf32>
    %c32_i32_110 = arith.constant 32 : i32
    %302 = tpu.dynamic_rotate %298 by %c32_i32_110 dim 1 : vector<8x128xf32>, i32 -> vector<8x128xf32>
    %303 = arith.mulf %300, %268 : vector<8x128xf32>
    %304 = arith.mulf %298, %301 : vector<8x128xf32>
    %305 = arith.addf %303, %304 : vector<8x128xf32>
    %306 = math.tanh %305 : vector<8x128xf32>
    %307 = arith.mulf %302, %306 : vector<8x128xf32>
    %308 = vector.extract_strided_slice %307 {offsets = [1, 0], sizes = [1, 128], strides = [1, 1]} : vector<8x128xf32> to vector<1x128xf32>
    %c7 = arith.constant 7 : index
    %c0_111 = arith.constant 0 : index
    %309 = vector.load %arg11[%c7, %c0_111] : memref<8x128xf32, #tpu.memory_space<vmem>>, vector<1x128xf32>
    tpu.vector_store %arg11[%c7, %c0_111], %308 {strides = array<i32>} : memref<8x128xf32, #tpu.memory_space<vmem>>, vector<1x128xf32>,
    %c0_112 = arith.constant 0 : index
    %c0_113 = arith.constant 0 : index
    %310 = vector.load %arg11[%c0_112, %c0_113] : memref<8x128xf32, #tpu.memory_space<vmem>>, vector<8x128xf32>
    %c0_114 = arith.constant 0 : index
    %c0_115 = arith.constant 0 : index
    %311 = vector.load %arg7[%c0_114, %c0_115] : memref<128x128xf32, #tpu.memory_space<vmem>>, vector<128x128xf32>
    %cst_116 = arith.constant dense<0.000000e+00> : vector<8x128xf32>
    %312 = tpu.matmul %310, %311, %cst_116 {dimension_numbers = #tpu.dot_dimension_numbers<[1], [0], [0], [1], [0, 0, 1, 1], [], []>} : vector<8x128xf32>, vector<128x128xf32>, vector<8x128xf32> -> vector<8x128xf32>
    %c0_117 = arith.constant 0 : index
    %c0_118 = arith.constant 0 : index
    %313 = vector.load %arg8[%c0_117, %c0_118] : memref<1x128xf32, #tpu.memory_space<vmem>>, vector<1x128xf32>
    %314 = vector.broadcast %313 : vector<1x128xf32> to vector<8x128xf32>
    %315 = arith.addf %312, %314 : vector<8x128xf32>
    %c0_119 = arith.constant 0 : index
    %c0_120 = arith.constant 0 : index
    %316 = vector.load %arg9[%c0_119, %c0_120] : memref<8x128xf32, #tpu.memory_space<vmem>>, vector<8x128xf32>
    tpu.vector_store %arg9[%c0_119, %c0_120], %315 {strides = array<i32>} : memref<8x128xf32, #tpu.memory_space<vmem>>, vector<8x128xf32>,
    return
  }
  func.func @transform_0(%arg0: i32) -> (i32, i32) {
    %c0_i32 = arith.constant 0 : i32
    %c0_i32_0 = arith.constant 0 : i32
    %c0_i32_1 = arith.constant 0 : i32
    return %c0_i32, %c0_i32_0 : i32, i32
  }
  func.func @transform_1(%arg0: i32) -> (i32, i32) {
    %c0_i32 = arith.constant 0 : i32
    %c0_i32_0 = arith.constant 0 : i32
    %c0_i32_1 = arith.constant 0 : i32
    return %c0_i32, %c0_i32_0 : i32, i32
  }
  func.func @transform_2(%arg0: i32) -> (i32, i32) {
    %c0_i32 = arith.constant 0 : i32
    %c0_i32_0 = arith.constant 0 : i32
    %c0_i32_1 = arith.constant 0 : i32
    return %c0_i32, %c0_i32_0 : i32, i32
  }
  func.func @transform_3(%arg0: i32) -> (i32, i32) {
    %c0_i32 = arith.constant 0 : i32
    %c0_i32_0 = arith.constant 0 : i32
    %c0_i32_1 = arith.constant 0 : i32
    return %c0_i32, %c0_i32_0 : i32, i32
  }
  func.func @transform_4(%arg0: i32) -> (i32, i32) {
    %c0_i32 = arith.constant 0 : i32
    %c0_i32_0 = arith.constant 0 : i32
    %c0_i32_1 = arith.constant 0 : i32
    return %c0_i32, %c0_i32_0 : i32, i32
  }
  func.func @transform_5(%arg0: i32) -> (i32, i32) {
    %c0_i32 = arith.constant 0 : i32
    %c0_i32_0 = arith.constant 0 : i32
    %c0_i32_1 = arith.constant 0 : i32
    return %c0_i32, %c0_i32_0 : i32, i32
  }
  func.func @transform_6(%arg0: i32) -> (i32, i32) {
    %c0_i32 = arith.constant 0 : i32
    %c0_i32_0 = arith.constant 0 : i32
    %c0_i32_1 = arith.constant 0 : i32
    return %c0_i32, %c0_i32_0 : i32, i32
  }
  func.func @transform_7(%arg0: i32) -> (i32, i32) {
    %c0_i32 = arith.constant 0 : i32
    %c0_i32_0 = arith.constant 0 : i32
    %c0_i32_1 = arith.constant 0 : i32
    return %c0_i32, %c0_i32_0 : i32, i32
  }
  func.func @transform_8(%arg0: i32) -> (i32, i32) {
    %c0_i32 = arith.constant 0 : i32
    %c0_i32_0 = arith.constant 0 : i32
    %c0_i32_1 = arith.constant 0 : i32
    return %c0_i32, %c0_i32_0 : i32, i32
  }
}

</mosaic_0001>

<bundles_post_ra>
// kernel: tpu_custom_call.1
= control target key start
LH: loop header
LB: loop body
LE: loop exit
PB: predicated region body
PF: predicated region fallthrough
CT: control target
= control target key end

     0   :  { %13 = vsyncpa [#allocation5], 0  ;;  %s4117_s0 = inlined_call_operand.hbm [shape: f32[64,128], index: 0, kind: input, shape index: {}]   ;;  %s4118_s1 = inlined_call_operand.hbm [shape: f32[128,128], index: 1, kind: input, shape index: {}]   ;;  %s4119_s2 = inlined_call_operand.hbm [shape: f32[128,128], index: 2, kind: input, shape index: {}]   ;;  %s4120_s3 = inlined_call_operand.vmem [shape: f32[1,128], index: 3, kind: input, shape index: {}]   ;;  %s4121_s4 = inlined_call_operand.hbm [shape: f32[256,128], index: 4, kind: input, shape index: {}]   ;;  %s4122_s5 = inlined_call_operand.vmem [shape: f32[1,128], index: 5, kind: input, shape index: {}]   ;;  %s4123_s6 = inlined_call_operand.hbm [shape: f32[128,128], index: 6, kind: input, shape index: {}]   ;;  %s4124_s7 = inlined_call_operand.vmem [shape: f32[1,128], index: 7, kind: input, shape index: {}]   ;;  %s4125_s8 = inlined_call_operand.hbm [shape: f32[8,128], index: 8, kind: output, shape index: {}]  }
   0x1   :  { %14 = vsyncpa [#allocation8], 0 }
   0x2   :  { %15 = vsyncpa [#allocation11], 0 }
   0x3   :  { %16 = vsyncpa [#allocation6], 0  ;;  %s3464_s27 = smov [#allocation7]   ;;  %s3465_s29 = smov [#allocation10]  }
   0x4   :  { %s34_s28 = sshll.u32 %s3464_s27, 4  ;;  %s60_s30 = sshll.u32 %s3465_s29, 4  ;;  %s35_s28 = int_to_ptr.vmem [resolvable:$true] %s34_s28  ;;  %s3523_s30 = int_to_ptr.vmem [resolvable:$true] %s60_s30 }
   0x5   :  { %s3324_s11 = scalar_lea.hbm %s4118_s1, 2048 }
   0x6   :  { %p3325_p0 = scmp.ne.s32.totalorder %s4118_s1, %s3324_s11  ;;  %p3328_p1 = scmp.lt.u32.totalorder %s3324_s11, %s4118_s1 }
   0x8   :  { %p3330_p2 = pnand %p3328_p1, %p3325_p0 }
   0xa   :  { %3333 = shalt.err (!%p3330_p2)
}
   0xb   :  { %s3334_s16 = scalar_lea.vmem %s35_s28, 2048  ;;  %p3339_p4 = scmp.lt.s32.totalorder %s35_s28, %s35_s28 }
   0xc   :  { %p3335_p3 = scmp.ne.s32.totalorder %s35_s28, %s3334_s16  ;;  %p3340_p5 = scmp.lt.s32.totalorder %s3334_s16, %s3334_s16 }
   0xe   :  { %p3341_p6 = por %p3340_p5, %p3339_p4 }
  0x10   :  { %p3342_p7 = pnand %p3341_p6, %p3335_p3 }
  0x12   :  { %3345 = shalt.err (!%p3342_p7)
}
  0x13   :  { %s3466_s17 = smov 128   ;;  %s3467_s18 = smov 8  }
  0x14   :  { %40 = dma.hbm_to_vmem [thread:$0]  %s4118_s1, 2048, %s35_s28, [#allocation8], %s3466_s17, %s3466_s17, %s3467_s18  }
  0x15   :  { %s3346_s23 = scalar_lea.hbm %s4121_s4, 4096 }
  0x16   :  { %p3347_p8 = scmp.ne.s32.totalorder %s4121_s4, %s3346_s23  ;;  %p3350_p9 = scmp.lt.u32.totalorder %s3346_s23, %s4121_s4 }
  0x18   :  { %p3352_p10 = pnand %p3350_p9, %p3347_p8 }
  0x1a   :  { %3355 = shalt.err (!%p3352_p10)
}
  0x1b   :  { %s3356_s29 = scalar_lea.vmem %s3523_s30, 4096  ;;  %p3361_p12 = scmp.lt.s32.totalorder %s3523_s30, %s3523_s30 }
  0x1c   :  { %p3357_p11 = scmp.ne.s32.totalorder %s3523_s30, %s3356_s29  ;;  %p3362_p13 = scmp.lt.s32.totalorder %s3356_s29, %s3356_s29 }
  0x1e   :  { %p3363_p0 = por %p3362_p13, %p3361_p12 }
  0x20   :  { %p3364_p1 = pnand %p3363_p0, %p3357_p11 }
  0x22   :  { %3367 = shalt.err (!%p3364_p1)
}
  0x23   :  { %66 = dma.hbm_to_vmem [thread:$0]  %s4121_s4, 4096, %s3523_s30, [#allocation11], %s3466_s17, %s3466_s17, %s3467_s18  }
  0x24   :  { %s3468_s9 = smov [#allocation4]   ;;  %s3469_s11 = smov [#allocation9]  }
  0x25   :  { %s22_s10 = sshll.u32 %s3468_s9, 4  ;;  %s46_s12 = sshll.u32 %s3469_s11, 4  ;;  %s23_s10 = int_to_ptr.vmem [resolvable:$true] %s22_s10  ;;  %s3560_s12 = int_to_ptr.vmem [resolvable:$true] %s46_s12 }
  0x26   :  { %s3368_s15 = scalar_lea.hbm %s4117_s0, 1024 }
  0x27   :  { %p3369_p2 = scmp.ne.s32.totalorder %s4117_s0, %s3368_s15  ;;  %p3372_p3 = scmp.lt.u32.totalorder %s3368_s15, %s4117_s0 }
  0x29   :  { %p3374_p4 = pnand %p3372_p3, %p3369_p2 }
  0x2b   :  { %3377 = shalt.err (!%p3374_p4)
}
  0x2c   :  { %s3378_s4 = scalar_lea.vmem %s23_s10, 1024  ;;  %p3383_p6 = scmp.lt.s32.totalorder %s23_s10, %s23_s10 }
  0x2d   :  { %p3379_p5 = scmp.ne.s32.totalorder %s23_s10, %s3378_s4  ;;  %p3384_p7 = scmp.lt.s32.totalorder %s3378_s4, %s3378_s4 }
  0x2f   :  { %p3385_p8 = por %p3384_p7, %p3383_p6 }
  0x31   :  { %p3386_p9 = pnand %p3385_p8, %p3379_p5 }
  0x33   :  { %3389 = shalt.err (!%p3386_p9)
}
  0x34   :  { %28 = dma.hbm_to_vmem [thread:$0]  %s4117_s0, 1024, %s23_s10, [#allocation5], %s3466_s17, %s3466_s17, %s3467_s18  }
  0x35   :  { %s3390_s25 = scalar_lea.hbm %s4119_s2, 2048 }
  0x36   :  { %p3391_p10 = scmp.ne.s32.totalorder %s4119_s2, %s3390_s25  ;;  %p3394_p11 = scmp.lt.u32.totalorder %s3390_s25, %s4119_s2 }
  0x38   :  { %p3396_p12 = pnand %p3394_p11, %p3391_p10 }
  0x3a   :  { %3399 = shalt.err (!%p3396_p12)
}
  0x3b   :  { %s3400_s28 = scalar_lea.vmem %s3560_s12, 2048  ;;  %p3405_p0 = scmp.lt.s32.totalorder %s3560_s12, %s3560_s12 }
  0x3c   :  { %p3401_p13 = scmp.ne.s32.totalorder %s3560_s12, %s3400_s28  ;;  %p3406_p1 = scmp.lt.s32.totalorder %s3400_s28, %s3400_s28 }
  0x3e   :  { %p3407_p2 = por %p3406_p1, %p3405_p0 }
  0x40   :  { %p3408_p3 = pnand %p3407_p2, %p3401_p13 }
  0x42   :  { %3411 = shalt.err (!%p3408_p3)
}
  0x43   :  { %52 = dma.hbm_to_vmem [thread:$0]  %s4119_s2, 2048, %s3560_s12, [#allocation8], %s3466_s17, %s3466_s17, %s3467_s18  }
  0x44   :  { %s3470_s10 = smov [#allocation12]   ;;  %s3412_s15 = scalar_lea.hbm %s4123_s6, 2048 }
  0x45   :  { %s74_s11 = sshll.u32 %s3470_s10, 4  ;;  %p3413_p4 = scmp.ne.s32.totalorder %s4123_s6, %s3412_s15  ;;  %s75_s11 = int_to_ptr.vmem [resolvable:$true] %s74_s11 }
  0x46   :  { %p3416_p5 = scmp.lt.u32.totalorder %s3412_s15, %s4123_s6 }
  0x48   :  { %p3418_p6 = pnand %p3416_p5, %p3413_p4 }
  0x4a   :  { %3421 = shalt.err (!%p3418_p6)
}
  0x4b   :  { %s3422_s4 = scalar_lea.vmem %s75_s11, 2048  ;;  %p3427_p8 = scmp.lt.s32.totalorder %s75_s11, %s75_s11 }
  0x4c   :  { %p3423_p7 = scmp.ne.s32.totalorder %s75_s11, %s3422_s4  ;;  %p3428_p9 = scmp.lt.s32.totalorder %s3422_s4, %s3422_s4 }
  0x4e   :  { %p3429_p10 = por %p3428_p9, %p3427_p8 }
  0x50   :  { %p3430_p11 = pnand %p3429_p10, %p3423_p7 }
  0x52   :  { %3433 = shalt.err (!%p3430_p11)
}
  0x53   :  { %80 = dma.hbm_to_vmem [thread:$0]  %s4123_s6, 2048, %s75_s11, [#allocation11], %s3466_s17, %s3466_s17, %s3467_s18  }
  0x54   :  { %3456 = dma.done.wait [#allocation5], 1024  }
  0x55   :  { %3457 = vsyncadd [#allocation5], 4294966272 }
  0x56   :  { %3458 = dma.done.wait [#allocation8], 4096  }
  0x57   :  { %3459 = vsyncadd [#allocation8], 4294963200 }
  0x58   :  { %3460 = dma.done.wait [#allocation11], 6144  }
  0x59   :  { %3461 = vsyncadd [#allocation11], 4294961152  ;;  %v3471_v0 = vmov 0.0|0.0   ;;  %vm3472_vm0 = vmmov 0   ;;  %v3473_v1 = vmov 0.0   ;;  %v106_v2 = vld [vmem:[#allocation7] sm:$0xff] }
  0x5a   :  { %2708 = vmatprep.subr.bf16.mxu1 %v3471_v0  ;;  %2393 = vmatprep.mubr.msk.f32.mxu1 %vm3472_vm0, %v3473_v1  ;;  %v107_v3 = vld [vmem:[#allocation7 + $0x8] sm:$0xff]  ;;  %v242_v4 = vld [vmem:[#allocation9] sm:$0xff]  ;;  %v108_v7 = vld [vmem:[#allocation7 + $0x10] sm:$0xff]  ;;  %s3474_s18 = smov 32   ;;  %s3475_s30 = smov 96  }
  0x5b   :  { %v2676_v5 = vpack.c.bf16 %v107_v3, %v106_v2  ;;  %v243_v6 = vld [vmem:[#allocation9 + $0x8] sm:$0xff]  ;;  %v109_v8 = vld [vmem:[#allocation7 + $0x18] sm:$0xff]  ;;  %v244_v11 = vld [vmem:[#allocation9 + $0x10] sm:$0xff]  ;;  %s3476_s22 = smov 64   ;;  %s3477_s1 = smov [#allocation13]  }
  0x5c   :  { %v3615_v9 = vpack.c.bf16 %v243_v6, %v242_v4  ;;  %v2680_v10 = vpack.c.bf16 %v109_v8, %v108_v7  ;;  %v245_v12 = vld [vmem:[#allocation9 + $0x18] sm:$0xff]  ;;  %v110_v13 = vld [vmem:[#allocation7 + $0x20] sm:$0xff]  ;;  %v111_v14 = vld [vmem:[#allocation7 + $0x28] sm:$0xff]  ;;  %s1830_s28 = sshll.u32 %s3477_s1, 4  ;;  %s1831_s28 = int_to_ptr.vmem [resolvable:$true] %s1830_s28 }
  0x5d   :  { %2677 = vmatprep.subr.bf16.mxu0 %v2676_v5  ;;  %v3618_v15 = vpack.c.bf16 %v245_v12, %v244_v11  ;;  %v2684_v16 = vpack.c.bf16 %v111_v14, %v110_v13  ;;  %v246_v17 = vld [vmem:[#allocation9 + $0x20] sm:$0xff]  ;;  %v247_v18 = vld [vmem:[#allocation9 + $0x28] sm:$0xff]  ;;  %v112_v19 = vld [vmem:[#allocation7 + $0x30] sm:$0xff]  ;;  %s3434_s0 = scalar_lea.vmem %s1831_s28, 128  ;;  %p3439_p13 = scmp.lt.s32.totalorder %s1831_s28, %s1831_s28 }
  0x5e   :  { %2679 = vmatpush3.bf16.msra.mxu0 %v2676_v5  ;;  %2710 = vmatpush3.bf16.msra.mxu1 %v3615_v9  ;;  %v113_v20 = vld [vmem:[#allocation7 + $0x38] sm:$0xff]  ;;  %v3622_v21 = vpack.c.bf16 %v247_v18, %v246_v17  ;;  %v248_v23 = vld [vmem:[#allocation9 + $0x30] sm:$0xff]  ;;  %v114_v25 = vld [vmem:[#allocation7 + $0x40] sm:$0xff]  ;;  %p3435_p12 = scmp.ne.s32.totalorder %s1831_s28, %s3434_s0  ;;  %p3440_p0 = scmp.lt.s32.totalorder %s3434_s0, %s3434_s0 }
  0x5f   :  { %2681 = vmatprep.subr.bf16.mxu0 %v2680_v10  ;;  %2711 = vmatprep.subr.bf16.mxu1 %v3471_v0  ;;  %v2688_v22 = vpack.c.bf16 %v113_v20, %v112_v19  ;;  %v249_v24 = vld [vmem:[#allocation9 + $0x38] sm:$0xff]  ;;  %v115_v26 = vld [vmem:[#allocation7 + $0x48] sm:$0xff]  ;;  %v98_v27 = vld [vmem:[#allocation4] sm:$0xff] }
  0x60   :  { %2349 = vmatprep.mubr.f32.mxu0 %v98_v27  ;;  %v3626_v28 = vpack.c.bf16 %v249_v24, %v248_v23  ;;  %v2692_v29 = vpack.c.bf16 %v115_v26, %v114_v25  ;;  %v250_v30 = vld [vmem:[#allocation9 + $0x40] sm:$0xff]  ;;  %v251_v31 = vld [vmem:[#allocation9 + $0x48] sm:$0xff]  ;;  %v116_v32 = vld [vmem:[#allocation7 + $0x50] sm:$0xff]  ;;  %p3441_p1 = por %p3440_p0, %p3439_p13 }
  0x61   :  { %v117_v33 = vld [vmem:[#allocation7 + $0x58] sm:$0xff]  ;;  %v3630_v34 = vpack.c.bf16 %v251_v31, %v250_v30  ;;  %v252_v36 = vld [vmem:[#allocation9 + $0x50] sm:$0xff]  ;;  %v118_v38 = vld [vmem:[#allocation7 + $0x60] sm:$0xff] }
  0x62   :  { %2683 = vmatpush3.bf16.msra.mxu0 %v2680_v10  ;;  %2713 = vmatpush3.bf16.msra.mxu1 %v3618_v15  ;;  %v2696_v35 = vpack.c.bf16 %v117_v33, %v116_v32  ;;  %v253_v37 = vld [vmem:[#allocation9 + $0x58] sm:$0xff]  ;;  %v119_v39 = vld [vmem:[#allocation7 + $0x68] sm:$0xff]  ;;  %v254_v42 = vld [vmem:[#allocation9 + $0x60] sm:$0xff]  ;;  %p3442_p2 = pnand %p3441_p1, %p3435_p12 }
  0x63   :  { %2685 = vmatprep.subr.bf16.mxu0 %v2684_v16  ;;  %2714 = vmatprep.subr.bf16.mxu1 %v3471_v0  ;;  %v3634_v40 = vpack.c.bf16 %v253_v37, %v252_v36  ;;  %v2700_v41 = vpack.c.bf16 %v119_v39, %v118_v38  ;;  %v255_v43 = vld [vmem:[#allocation9 + $0x68] sm:$0xff]  ;;  %v120_v44 = vld [vmem:[#allocation7 + $0x70] sm:$0xff]  ;;  %v121_v45 = vld [vmem:[#allocation7 + $0x78] sm:$0xff] }
  0x64   :  { %v3638_v46 = vpack.c.bf16 %v255_v43, %v254_v42  ;;  %v2704_v47 = vpack.c.bf16 %v121_v45, %v120_v44  ;;  %v256_v48 = vld [vmem:[#allocation9 + $0x70] sm:$0xff]  ;;  %v257_v49 = vld [vmem:[#allocation9 + $0x78] sm:$0xff]  ;;  %v99_v51 = vld [vmem:[#allocation4 + $0x8] sm:$0xff] }
  0x65   :  { %v3642_v50 = vpack.c.bf16 %v257_v49, %v256_v48  ;;  %v274_v52 = vld [vmem:[#allocation10 + $0x80] sm:$0xff]  ;;  %v275_v53 = vld [vmem:[#allocation10 + $0x88] sm:$0xff]  ;;  %v276_v57 = vld [vmem:[#allocation10 + $0x90] sm:$0xff] }
  0x66   :  { %2687 = vmatpush3.bf16.msra.mxu0 %v2684_v16  ;;  %2716 = vmatpush3.bf16.msra.mxu1 %v3622_v21  ;;  %v258_v54 = vld [vmem:[#allocation10] sm:$0xff]  ;;  %v3666_v55 = vpack.c.bf16 %v275_v53, %v274_v52  ;;  %v259_v56 = vld [vmem:[#allocation10 + $0x8] sm:$0xff]  ;;  %v277_v58 = vld [vmem:[#allocation10 + $0x98] sm:$0xff] }
  0x67   :  { %2689 = vmatprep.subr.bf16.mxu0 %v2688_v22  ;;  %2717 = vmatprep.subr.bf16.mxu1 %v3471_v0  ;;  %v3668_v59 = vpack.c.bf16 %v259_v56, %v258_v54  ;;  %v3670_v60 = vpack.c.bf16 %v277_v58, %v276_v57  ;;  %v260_v61 = vld [vmem:[#allocation10 + $0x10] sm:$0xff]  ;;  %v261_v62 = vld [vmem:[#allocation10 + $0x18] sm:$0xff]  ;;  %v278_v63 = vld [vmem:[#allocation10 + $0xa0] sm:$0xff] }
  0x68   :  { %v279_v2 = vld [vmem:[#allocation10 + $0xa8] sm:$0xff]  ;;  %v3674_v3 = vpack.c.bf16 %v261_v62, %v260_v61  ;;  %v262_v5 = vld [vmem:[#allocation10 + $0x20] sm:$0xff]  ;;  %v3687_v8 = vld [vmem:[%s4120_s3] ss:$0 sm:$0xff] }
  0x69   :  { %v3677_v4 = vpack.c.bf16 %v279_v2, %v278_v63  ;;  %v263_v6 = vld [vmem:[#allocation10 + $0x28] sm:$0xff]  ;;  %v280_v18 = vld [vmem:[#allocation10 + $0xb0] sm:$0xff]  ;;  %v281_v19 = vld [vmem:[#allocation10 + $0xb8] sm:$0xff] }
  0x6a   :  { %2691 = vmatpush3.bf16.msra.mxu0 %v2688_v22  ;;  %2719 = vmatpush3.bf16.msra.mxu1 %v3626_v28  ;;  %v3680_v7 = vpack.c.bf16 %v263_v6, %v262_v5  ;;  %v3692_v22 = vpack.c.bf16 %v281_v19, %v280_v18  ;;  %v264_v23 = vld [vmem:[#allocation10 + $0x30] sm:$0xff]  ;;  %v265_v24 = vld [vmem:[#allocation10 + $0x38] sm:$0xff]  ;;  %v282_v27 = vld [vmem:[#allocation10 + $0xc0] sm:$0xff] }
  0x6b   :  { %2693 = vmatprep.subr.bf16.mxu0 %v2692_v29  ;;  %2720 = vmatprep.subr.bf16.mxu1 %v3471_v0  ;;  %v3694_v26 = vpack.c.bf16 %v265_v24, %v264_v23  ;;  %v266_v31 = vld [vmem:[#allocation10 + $0x40] sm:$0xff]  ;;  %v267_v32 = vld [vmem:[#allocation10 + $0x48] sm:$0xff]  ;;  %v284_v36 = vld [vmem:[#allocation10 + $0xd0] sm:$0xff] }
  0x6c   :  { %v3700_v33 = vpack.c.bf16 %v267_v32, %v266_v31  ;;  %v285_v37 = vld [vmem:[#allocation10 + $0xd8] sm:$0xff]  ;;  %v102_v44 = vld [vmem:[#allocation4 + $0x20] sm:$0xff]  ;;  %v103_v45 = vld [vmem:[#allocation4 + $0x28] sm:$0xff] }
  0x6d   :  { %v101_v38 = vld [vmem:[#allocation4 + $0x18] sm:$0xff]  ;;  %v3704_v39 = vpack.c.bf16 %v285_v37, %v284_v36  ;;  %v287_v48 = vld [vmem:[#allocation10 + $0xe8] sm:$0xff]  ;;  %v270_v49 = vld [vmem:[#allocation10 + $0x60] sm:$0xff] }
  0x6e   :  { %2695 = vmatpush3.bf16.msra.mxu0 %v2692_v29  ;;  %2722 = vmatpush3.bf16.msra.mxu1 %v3630_v34  ;;  %v283_v29 = vld [vmem:[#allocation10 + $0xc8] sm:$0xff]  ;;  %v269_v42 = vld [vmem:[#allocation10 + $0x58] sm:$0xff]  ;;  %v104_v54 = vld [vmem:[#allocation4 + $0x30] sm:$0xff] }
  0x6f   :  { %2697 = vmatprep.subr.bf16.mxu0 %v2696_v35  ;;  %2723 = vmatprep.subr.bf16.mxu1 %v3471_v0  ;;  %v3698_v30 = vpack.c.bf16 %v283_v29, %v282_v27  ;;  %v288_v56 = vld [vmem:[#allocation10 + $0xf0] sm:$0xff]  ;;  %v289_v57 = vld [vmem:[#allocation10 + $0xf8] sm:$0xff] }
  0x70   :  { %v272_v58 = vld [vmem:[#allocation10 + $0x70] sm:$0xff]  ;;  %v273_v61 = vld [vmem:[#allocation10 + $0x78] sm:$0xff]  ;;  %v3715_v63 = vpack.c.bf16 %v289_v57, %v288_v56 }
  0x71   :  { %v105_v2 = vld [vmem:[#allocation4 + $0x38] sm:$0xff]  ;;  %v3720_v5 = vpack.c.bf16 %v273_v61, %v272_v58 }
  0x72   :  { %2699 = vmatpush3.bf16.msra.mxu0 %v2696_v35  ;;  %2725 = vmatpush3.bf16.msra.mxu1 %v3634_v40  ;;  %v100_v35 = vld [vmem:[#allocation4 + $0x10] sm:$0xff]  ;;  %v3781_v37 = vld [vmem:[%s4122_s5] ss:$0 sm:$0xff] }
  0x73   :  { %2701 = vmatprep.subr.bf16.mxu0 %v2700_v41  ;;  %2726 = vmatprep.subr.bf16.mxu1 %v3471_v0 }
  0x76   :  { %2703 = vmatpush3.bf16.msra.mxu0 %v2700_v41  ;;  %2728 = vmatpush3.bf16.msra.mxu1 %v3638_v46  ;;  %v268_v41 = vld [vmem:[#allocation10 + $0x50] sm:$0xff] }
  0x77   :  { %2705 = vmatprep.subr.bf16.mxu0 %v2704_v47  ;;  %2729 = vmatprep.subr.bf16.mxu1 %v3471_v0  ;;  %v3706_v43 = vpack.c.bf16 %v269_v42, %v268_v41 }
  0x7a   :  { %2707 = vmatpush3.bf16.msra.mxu0 %v2704_v47  ;;  %2731 = vmatpush3.bf16.msra.mxu1 %v3642_v50  ;;  %v286_v47 = vld [vmem:[#allocation10 + $0xe0] sm:$0xff] }
  0x7b   :  { %2764 = vmatprep.subr.bf16.mxu1 %v3471_v0  ;;  %2733 = vmatprep.subr.bf16.mxu0 %v3666_v55  ;;  %v3710_v52 = vpack.c.bf16 %v287_v48, %v286_v47 }
  0x7d   :  { %2350 = vmatmul.mubr.f32.vlgmr.msra.gmra.mrb[0].mxu0 %v99_v51  ;;  %2394 = vmatmul.mubr.f32.vlgmr.msra.gmra.mrb[0].mxu1 %v3473_v1  ;;  %v271_v51 = vld [vmem:[#allocation10 + $0x68] sm:$0xff] }
  0x7e   :  { %2766 = vmatpush3.bf16.msra.mxu1 %v3615_v9  ;;  %2428 = vmatprep.mubr.msk.f32.mxu1 %vm3472_vm0, %v3473_v1  ;;  %v3712_v53 = vpack.c.bf16 %v271_v51, %v270_v49 }
  0x7f   :  { %2767 = vmatprep.subr.bf16.mxu1 %v3471_v0  ;;  %2735 = vmatpush3.bf16.msra.mxu0 %v3668_v59 }
  0x80   :  { %2737 = vmatprep.subr.bf16.mxu0 %v3670_v60  ;;  %2352 = vmatprep.mubr.f32.mxu0 %v100_v35 }
  0x81   :  { %2353 = vmatmul.mubr.f32.gmra.mrb[2].mxu0 %v101_v38 }
  0x82   :  { %2769 = vmatpush3.bf16.msra.mxu1 %v3618_v15  ;;  %2355 = vmatprep.mubr.f32.mxu0 %v102_v44 }
  0x83   :  { %2770 = vmatprep.subr.bf16.mxu1 %v3471_v0  ;;  %2739 = vmatpush3.bf16.msra.mxu0 %v3674_v3 }
  0x84   :  { %2741 = vmatprep.subr.bf16.mxu0 %v3677_v4 }
  0x85   :  { %2356 = vmatmul.mubr.f32.gmra.mrb[4].mxu0 %v103_v45 }
  0x86   :  { %2772 = vmatpush3.bf16.msra.mxu1 %v3622_v21  ;;  %2358 = vmatprep.mubr.f32.mxu0 %v104_v54 }
  0x87   :  { %2773 = vmatprep.subr.bf16.mxu1 %v3471_v0  ;;  %2743 = vmatpush3.bf16.msra.mxu0 %v3680_v7 }
  0x88   :  { %2745 = vmatprep.subr.bf16.mxu0 %v3692_v22 }
  0x89   :  { %2359 = vmatmul.mubr.f32.gmra.mrb[6].mxu0 %v105_v2 }
  0x8a   :  { %2775 = vmatpush3.bf16.msra.mxu1 %v3626_v28  ;;  %451 = vmatprep.mubr.f32.mxu0 %v3473_v1 }
  0x8b   :  { %2776 = vmatprep.subr.bf16.mxu1 %v3471_v0  ;;  %2747 = vmatpush3.bf16.msra.mxu0 %v3694_v26 }
  0x8c   :  { %2749 = vmatprep.subr.bf16.mxu0 %v3698_v30 }
  0x8e   :  { %2778 = vmatpush3.bf16.msra.mxu1 %v3630_v34 }
  0x8f   :  { %2779 = vmatprep.subr.bf16.mxu1 %v3471_v0  ;;  %2751 = vmatpush3.bf16.msra.mxu0 %v3700_v33 }
  0x90   :  { %2753 = vmatprep.subr.bf16.mxu0 %v3704_v39 }
  0x92   :  { %2781 = vmatpush3.bf16.msra.mxu1 %v3634_v40 }
  0x93   :  { %2782 = vmatprep.subr.bf16.mxu1 %v3471_v0  ;;  %2755 = vmatpush3.bf16.msra.mxu0 %v3706_v43 }
  0x94   :  { %2757 = vmatprep.subr.bf16.mxu0 %v3710_v52 }
  0x96   :  { %2784 = vmatpush3.bf16.msra.mxu1 %v3638_v46 }
  0x97   :  { %2785 = vmatprep.subr.bf16.mxu1 %v3471_v0  ;;  %2759 = vmatpush3.bf16.msra.mxu0 %v3712_v53 }
  0x98   :  { %2761 = vmatprep.subr.bf16.mxu0 %v3715_v63 }
  0x9a   :  { %2787 = vmatpush3.bf16.msra.mxu1 %v3642_v50 }
  0x9b   :  { %2820 = vmatprep.subr.bf16.mxu1 %v3471_v0  ;;  %2763 = vmatpush3.bf16.msra.mxu0 %v3720_v5 }
  0x9c   :  { %2789 = vmatprep.subr.bf16.mxu0 %v3666_v55 }
 0x150   :  { %v3689_v10 = vpop.f32.mrb[0].mxu0  ;;  %v358_v11 = vpop.f32.mrb[0].mxu1 }
 0x151   :  { %v195_v12 = vpop.f32.mrb[1].mxu0  ;;  %v2395_v13 = vpop.f32.mrb[1].mxu1  ;;  %v201_v31 = vadd.f32 %v3689_v10, %v3687_v8 }
 0x152   :  { %v196_v14 = vadd.f32 %v3687_v8, %v195_v12 }
 0x154   :  { %v362_v16 = vadd.f32 %v358_v11, %v196_v14 }
 0x156   :  { %v1842_v17 = vmul.f32 -1.442695, %v362_v16 }
 0x158   :  { %3194 = vpow2.f32 %v1842_v17 }
 0x162   :  { %v3195_v20 = vpop.eup %3194 }
 0x163   :  { %v366_v25 = vadd.f32 1.0, %v3195_v20  ;;  %v3764_v20 = vpop.f32.mrb[2].mxu0 }
 0x164   :  { %v3766_v23 = vpop.f32.mrb[3].mxu0 }
 0x165   :  { %3196 = vrcp.f32 %v366_v25  ;;  %v3768_v24 = vpop.f32.mrb[4].mxu0 }
 0x166   :  { %3198 = vtanh.f32 %v362_v16  ;;  %v3770_v25 = vpop.f32.mrb[5].mxu0 }
 0x167   :  { %v3772_v27 = vpop.f32.mrb[6].mxu0 }
 0x168   :  { %v3774_v29 = vpop.f32.mrb[7].mxu0 }
 0x16f   :  { %v3197_v62 = vpop.eup %3196 }
 0x170   :  { %374 = vrot.lane.b32.xlu1 %v3197_v62, %s3474_s18  ;;  %370 = vrot.lane.b32.xlu0 %v3197_v62, %s3475_s30  ;;  %v3199_v6 = vpop.eup %3198 }
 0x174   :  { %372 = vrot.lane.b32.xlu0 %v3199_v6, %s3476_s22 }
 0x1e2   :  { %v371_v11 = vpop.permute.xlu0 %370  ;;  %v375_v18 = vpop.permute.xlu1 %374 }
 0x1e3   :  { %v376_v13 = vmul.f32 0.0, %v371_v11 }
 0x1e6   :  { %v373_v12 = vpop.permute.xlu0 %372 }
 0x1e7   :  { %v377_v14 = vmul.f32 %v3197_v62, %v373_v12 }
 0x1e9   :  { %v3727_v16 = vadd.f32 %v377_v14, %v376_v13 }
 0x1eb   :  { %3200 = vtanh.f32 %v3727_v16 }
 0x1f5   :  { %v3201_v17 = vpop.eup %3200 }
 0x1f6   :  { %v380_v19 = vmul.f32 %v3201_v17, %v375_v18 }
 0x1f8   :  { %452 = vmatmul.mubr.f32.vlgmr.msra.gmra.mrb[8].mxu0 %v380_v19  ;;  %2429 = vmatmul.mubr.f32.vlgmr.msra.gmra.mrb[2].mxu1 %v380_v19 }
 0x1f9   :  { %2791 = vmatpush3.bf16.msra.mxu0 %v3668_v59  ;;  %2822 = vmatpush3.bf16.msra.mxu1 %v3615_v9 }
 0x1fa   :  { %2793 = vmatprep.subr.bf16.mxu0 %v3670_v60  ;;  %2823 = vmatprep.subr.bf16.mxu1 %v3471_v0 }
 0x1fb   :  { %2463 = vmatprep.mubr.msk.f32.mxu1 %vm3472_vm0, %v3473_v1 }
 0x1fd   :  { %2795 = vmatpush3.bf16.msra.mxu0 %v3674_v3  ;;  %2825 = vmatpush3.bf16.msra.mxu1 %v3618_v15 }
 0x1fe   :  { %2797 = vmatprep.subr.bf16.mxu0 %v3677_v4  ;;  %2826 = vmatprep.subr.bf16.mxu1 %v3471_v0 }
 0x201   :  { %2799 = vmatpush3.bf16.msra.mxu0 %v3680_v7  ;;  %2828 = vmatpush3.bf16.msra.mxu1 %v3622_v21 }
 0x202   :  { %2801 = vmatprep.subr.bf16.mxu0 %v3692_v22  ;;  %2829 = vmatprep.subr.bf16.mxu1 %v3471_v0 }
 0x205   :  { %2803 = vmatpush3.bf16.msra.mxu0 %v3694_v26  ;;  %2831 = vmatpush3.bf16.msra.mxu1 %v3626_v28 }
 0x206   :  { %2805 = vmatprep.subr.bf16.mxu0 %v3698_v30  ;;  %2832 = vmatprep.subr.bf16.mxu1 %v3471_v0 }
 0x209   :  { %2807 = vmatpush3.bf16.msra.mxu0 %v3700_v33  ;;  %2834 = vmatpush3.bf16.msra.mxu1 %v3630_v34 }
 0x20a   :  { %2809 = vmatprep.subr.bf16.mxu0 %v3704_v39  ;;  %2835 = vmatprep.subr.bf16.mxu1 %v3471_v0 }
 0x20d   :  { %2811 = vmatpush3.bf16.msra.mxu0 %v3706_v43  ;;  %2837 = vmatpush3.bf16.msra.mxu1 %v3634_v40 }
 0x20e   :  { %2813 = vmatprep.subr.bf16.mxu0 %v3710_v52  ;;  %2838 = vmatprep.subr.bf16.mxu1 %v3471_v0 }
 0x211   :  { %2815 = vmatpush3.bf16.msra.mxu0 %v3712_v53  ;;  %2840 = vmatpush3.bf16.msra.mxu1 %v3638_v46 }
 0x212   :  { %2817 = vmatprep.subr.bf16.mxu0 %v3715_v63  ;;  %2841 = vmatprep.subr.bf16.mxu1 %v3471_v0 }
 0x215   :  { %2819 = vmatpush3.bf16.msra.mxu0 %v3720_v5  ;;  %2843 = vmatpush3.bf16.msra.mxu1 %v3642_v50 }
 0x216   :  { %2845 = vmatprep.subr.bf16.mxu0 %v3666_v55  ;;  %2876 = vmatprep.subr.bf16.mxu1 %v3471_v0 }
 0x2cb   :  { %v1933_v32 = vpop.f32.mrb[8].mxu0  ;;  %v543_v35 = vpop.f32.mrb[2].mxu1 }
 0x2cc   :  { %v547_v36 = vadd.f32 %v543_v35, %v201_v31  ;;  %v1934_v38 = vpop.f32.mrb[9].mxu0  ;;  %v2430_v41 = vpop.f32.mrb[3].mxu1 }
 0x2cd   :  { %v1935_v42 = vadd.f32 %v1934_v38, %v1933_v32 }
 0x2ce   :  { %v1845_v44 = vmul.f32 -1.442695, %v547_v36 }
 0x2cf   :  { %v454_v45 = vadd.f32 %v1935_v42, %v3781_v37 }
 0x2d0   :  { %3202 = vpow2.f32 %v1845_v44 }
 0x2d1   :  { %v1844_v47 = vmul.f32 -1.442695, %v454_v45  ;;  %3204 = vtanh.f32 %v454_v45 }
 0x2d3   :  { %3206 = vpow2.f32 %v1844_v47 }
 0x2d4   :  { %3208 = vtanh.f32 %v547_v36 }
 0x2da   :  { %v3203_v10 = vpop.eup %3202 }
 0x2db   :  { %v3205_v48 = vpop.eup %3204  ;;  %v551_v49 = vadd.f32 1.0, %v3203_v10 }
 0x2dc   :  { %466 = vrot.lane.b32.xlu0 %v3205_v48, %s3476_s22 }
 0x2dd   :  { %v3207_v51 = vpop.eup %3206  ;;  %3210 = vrcp.f32 %v551_v49 }
 0x2de   :  { %v460_v54 = vadd.f32 1.0, %v3207_v51  ;;  %v3209_v56 = vpop.eup %3208 }
 0x2e0   :  { %3212 = vrcp.f32 %v460_v54  ;;  %557 = vrot.lane.b32.xlu0 %v3209_v56, %s3476_s22 }
 0x2e7   :  { %v3211_v57 = vpop.eup %3210 }
 0x2e8   :  { %559 = vrot.lane.b32.xlu0 %v3211_v57, %s3474_s18 }
 0x2ea   :  { %v3213_v58 = vpop.eup %3212 }
 0x2eb   :  { %464 = vrot.lane.b32.xlu1 %v3213_v58, %s3475_s30 }
 0x2ef   :  { %555 = vrot.lane.b32.xlu1 %v3211_v57, %s3475_s30 }
 0x2f3   :  { %468 = vrot.lane.b32.xlu1 %v3213_v58, %s3474_s18 }
 0x34e   :  { %v467_v61 = vpop.permute.xlu0 %466 }
 0x34f   :  { %v471_v2 = vmul.f32 %v3213_v58, %v467_v61 }
 0x352   :  { %v558_v11 = vpop.permute.xlu0 %557 }
 0x353   :  { %v562_v14 = vmul.f32 %v3211_v57, %v558_v11 }
 0x35a   :  { %v560_v36 = vpop.permute.xlu0 %559 }
 0x35d   :  { %v465_v62 = vpop.permute.xlu1 %464 }
 0x35e   :  { %v470_v6 = vmul.f32 0.0, %v465_v62 }
 0x360   :  { %v3790_v12 = vadd.f32 %v471_v2, %v470_v6 }
 0x361   :  { %v556_v13 = vpop.permute.xlu1 %555 }
 0x362   :  { %3214 = vtanh.f32 %v3790_v12  ;;  %v561_v17 = vmul.f32 %v556_v13, %v3727_v16  ;;  %v206_v16 = vadd.f32 %v3687_v8, %v3766_v23 }
 0x364   :  { %v3794_v18 = vadd.f32 %v562_v14, %v561_v17 }
 0x365   :  { %v469_v31 = vpop.permute.xlu1 %468 }
 0x366   :  { %3216 = vtanh.f32 %v3794_v18 }
 0x36c   :  { %v3215_v19 = vpop.eup %3214 }
 0x36d   :  { %v474_v32 = vmul.f32 %v3215_v19, %v469_v31 }
 0x36f   :  { %475 = vst [vmem:[#allocation3 - $0x1] sm:$0x2] %v474_v32  ;;  %630 = vmatprep.mubr.f32.mxu0 %v474_v32 }
 0x370   :  { %v3217_v35 = vpop.eup %3216 }
 0x371   :  { %v565_v38 = vmul.f32 %v3217_v35, %v560_v36 }
 0x373   :  { %631 = vmatmul.mubr.f32.vlgmr.msra.gmra.mrb[10].mxu0 %v565_v38  ;;  %2464 = vmatmul.mubr.f32.vlgmr.msra.gmra.mrb[4].mxu1 %v565_v38 }
 0x374   :  { %2847 = vmatpush3.bf16.msra.mxu0 %v3668_v59  ;;  %2878 = vmatpush3.bf16.msra.mxu1 %v3615_v9 }
 0x375   :  { %2849 = vmatprep.subr.bf16.mxu0 %v3670_v60  ;;  %2879 = vmatprep.subr.bf16.mxu1 %v3471_v0 }
 0x376   :  { %2498 = vmatprep.mubr.msk.f32.mxu1 %vm3472_vm0, %v3473_v1 }
 0x378   :  { %2851 = vmatpush3.bf16.msra.mxu0 %v3674_v3  ;;  %2881 = vmatpush3.bf16.msra.mxu1 %v3618_v15 }
 0x379   :  { %2853 = vmatprep.subr.bf16.mxu0 %v3677_v4  ;;  %2882 = vmatprep.subr.bf16.mxu1 %v3471_v0 }
 0x37c   :  { %2855 = vmatpush3.bf16.msra.mxu0 %v3680_v7  ;;  %2884 = vmatpush3.bf16.msra.mxu1 %v3622_v21 }
 0x37d   :  { %2857 = vmatprep.subr.bf16.mxu0 %v3692_v22  ;;  %2885 = vmatprep.subr.bf16.mxu1 %v3471_v0 }
 0x380   :  { %2859 = vmatpush3.bf16.msra.mxu0 %v3694_v26  ;;  %2887 = vmatpush3.bf16.msra.mxu1 %v3626_v28 }
 0x381   :  { %2861 = vmatprep.subr.bf16.mxu0 %v3698_v30  ;;  %2888 = vmatprep.subr.bf16.mxu1 %v3471_v0 }
 0x384   :  { %2863 = vmatpush3.bf16.msra.mxu0 %v3700_v33  ;;  %2890 = vmatpush3.bf16.msra.mxu1 %v3630_v34 }
 0x385   :  { %2865 = vmatprep.subr.bf16.mxu0 %v3704_v39  ;;  %2891 = vmatprep.subr.bf16.mxu1 %v3471_v0 }
 0x388   :  { %2867 = vmatpush3.bf16.msra.mxu0 %v3706_v43  ;;  %2893 = vmatpush3.bf16.msra.mxu1 %v3634_v40 }
 0x389   :  { %2869 = vmatprep.subr.bf16.mxu0 %v3710_v52  ;;  %2894 = vmatprep.subr.bf16.mxu1 %v3471_v0 }
 0x38c   :  { %2871 = vmatpush3.bf16.msra.mxu0 %v3712_v53  ;;  %2896 = vmatpush3.bf16.msra.mxu1 %v3638_v46 }
 0x38d   :  { %2873 = vmatprep.subr.bf16.mxu0 %v3715_v63  ;;  %2897 = vmatprep.subr.bf16.mxu1 %v3471_v0 }
 0x390   :  { %2875 = vmatpush3.bf16.msra.mxu0 %v3720_v5  ;;  %2899 = vmatpush3.bf16.msra.mxu1 %v3642_v50 }
 0x391   :  { %2901 = vmatprep.subr.bf16.mxu0 %v3666_v55  ;;  %2932 = vmatprep.subr.bf16.mxu1 %v3471_v0 }
 0x446   :  { %v1985_v41 = vpop.f32.mrb[10].mxu0  ;;  %v722_v42 = vpop.f32.mrb[4].mxu1 }
 0x447   :  { %v726_v44 = vadd.f32 %v722_v42, %v206_v16  ;;  %v1986_v45 = vpop.f32.mrb[11].mxu0  ;;  %v2465_v47 = vpop.f32.mrb[5].mxu1 }
 0x448   :  { %v1987_v10 = vadd.f32 %v1986_v45, %v1985_v41 }
 0x449   :  { %v1847_v48 = vmul.f32 -1.442695, %v726_v44 }
 0x44a   :  { %v633_v49 = vadd.f32 %v1987_v10, %v3781_v37 }
 0x44b   :  { %3218 = vpow2.f32 %v1847_v48 }
 0x44c   :  { %v1846_v51 = vmul.f32 -1.442695, %v633_v49  ;;  %3220 = vtanh.f32 %v633_v49 }
 0x44e   :  { %3222 = vpow2.f32 %v1846_v51 }
 0x44f   :  { %3224 = vtanh.f32 %v726_v44 }
 0x455   :  { %v3219_v54 = vpop.eup %3218 }
 0x456   :  { %v3221_v56 = vpop.eup %3220  ;;  %v730_v57 = vadd.f32 1.0, %v3219_v54 }
 0x457   :  { %645 = vrot.lane.b32.xlu0 %v3221_v56, %s3476_s22 }
 0x458   :  { %v3223_v23 = vpop.eup %3222  ;;  %3226 = vrcp.f32 %v730_v57 }
 0x459   :  { %v639_v58 = vadd.f32 1.0, %v3223_v23  ;;  %v3225_v61 = vpop.eup %3224 }
 0x45b   :  { %3228 = vrcp.f32 %v639_v58  ;;  %736 = vrot.lane.b32.xlu0 %v3225_v61, %s3476_s22 }
 0x462   :  { %v3227_v62 = vpop.eup %3226 }
 0x463   :  { %738 = vrot.lane.b32.xlu0 %v3227_v62, %s3474_s18 }
 0x465   :  { %v3229_v2 = vpop.eup %3228 }
 0x466   :  { %643 = vrot.lane.b32.xlu1 %v3229_v2, %s3475_s30 }
 0x46a   :  { %734 = vrot.lane.b32.xlu1 %v3227_v62, %s3475_s30 }
 0x46e   :  { %647 = vrot.lane.b32.xlu1 %v3229_v2, %s3474_s18 }
 0x4c9   :  { %v646_v6 = vpop.permute.xlu0 %645 }
 0x4ca   :  { %v650_v13 = vmul.f32 %v3229_v2, %v646_v6 }
 0x4cd   :  { %v737_v17 = vpop.permute.xlu0 %736 }
 0x4ce   :  { %v741_v32 = vmul.f32 %v3227_v62, %v737_v17 }
 0x4d8   :  { %v644_v11 = vpop.permute.xlu1 %643 }
 0x4d9   :  { %v649_v14 = vmul.f32 %v644_v11, %v3790_v12  ;;  %v739_v12 = vpop.permute.xlu0 %738 }
 0x4db   :  { %v3841_v19 = vadd.f32 %v650_v13, %v649_v14 }
 0x4dc   :  { %v735_v31 = vpop.permute.xlu1 %734 }
 0x4dd   :  { %3230 = vtanh.f32 %v3841_v19  ;;  %v740_v35 = vmul.f32 %v735_v31, %v3794_v18  ;;  %v211_v18 = vadd.f32 %v3764_v20, %v3687_v8 }
 0x4df   :  { %v3845_v36 = vadd.f32 %v741_v32, %v740_v35 }
 0x4e0   :  { %v648_v16 = vpop.permute.xlu1 %647 }
 0x4e1   :  { %3232 = vtanh.f32 %v3845_v36 }
 0x4e7   :  { %v3231_v38 = vpop.eup %3230 }
 0x4e8   :  { %v653_v41 = vmul.f32 %v3231_v38, %v648_v16 }
 0x4ea   :  { %654 = vst [vmem:[#allocation3] sm:$0x2] %v653_v41  ;;  %809 = vmatprep.mubr.f32.mxu0 %v653_v41 }
 0x4eb   :  { %v3233_v42 = vpop.eup %3232 }
 0x4ec   :  { %v744_v44 = vmul.f32 %v3233_v42, %v739_v12 }
 0x4ee   :  { %810 = vmatmul.mubr.f32.vlgmr.msra.gmra.mrb[12].mxu0 %v744_v44  ;;  %2499 = vmatmul.mubr.f32.vlgmr.msra.gmra.mrb[6].mxu1 %v744_v44 }
 0x4ef   :  { %2903 = vmatpush3.bf16.msra.mxu0 %v3668_v59  ;;  %2934 = vmatpush3.bf16.msra.mxu1 %v3615_v9 }
 0x4f0   :  { %2905 = vmatprep.subr.bf16.mxu0 %v3670_v60  ;;  %2935 = vmatprep.subr.bf16.mxu1 %v3471_v0 }
 0x4f1   :  { %2533 = vmatprep.mubr.msk.f32.mxu1 %vm3472_vm0, %v3473_v1 }
 0x4f3   :  { %2907 = vmatpush3.bf16.msra.mxu0 %v3674_v3  ;;  %2937 = vmatpush3.bf16.msra.mxu1 %v3618_v15 }
 0x4f4   :  { %2909 = vmatprep.subr.bf16.mxu0 %v3677_v4  ;;  %2938 = vmatprep.subr.bf16.mxu1 %v3471_v0 }
 0x4f7   :  { %2911 = vmatpush3.bf16.msra.mxu0 %v3680_v7  ;;  %2940 = vmatpush3.bf16.msra.mxu1 %v3622_v21 }
 0x4f8   :  { %2913 = vmatprep.subr.bf16.mxu0 %v3692_v22  ;;  %2941 = vmatprep.subr.bf16.mxu1 %v3471_v0 }
 0x4fb   :  { %2915 = vmatpush3.bf16.msra.mxu0 %v3694_v26  ;;  %2943 = vmatpush3.bf16.msra.mxu1 %v3626_v28 }
 0x4fc   :  { %2917 = vmatprep.subr.bf16.mxu0 %v3698_v30  ;;  %2944 = vmatprep.subr.bf16.mxu1 %v3471_v0 }
 0x4ff   :  { %2919 = vmatpush3.bf16.msra.mxu0 %v3700_v33  ;;  %2946 = vmatpush3.bf16.msra.mxu1 %v3630_v34 }
 0x500   :  { %2921 = vmatprep.subr.bf16.mxu0 %v3704_v39  ;;  %2947 = vmatprep.subr.bf16.mxu1 %v3471_v0 }
 0x503   :  { %2923 = vmatpush3.bf16.msra.mxu0 %v3706_v43  ;;  %2949 = vmatpush3.bf16.msra.mxu1 %v3634_v40 }
 0x504   :  { %2925 = vmatprep.subr.bf16.mxu0 %v3710_v52  ;;  %2950 = vmatprep.subr.bf16.mxu1 %v3471_v0 }
 0x507   :  { %2927 = vmatpush3.bf16.msra.mxu0 %v3712_v53  ;;  %2952 = vmatpush3.bf16.msra.mxu1 %v3638_v46 }
 0x508   :  { %2929 = vmatprep.subr.bf16.mxu0 %v3715_v63  ;;  %2953 = vmatprep.subr.bf16.mxu1 %v3471_v0 }
 0x50b   :  { %2931 = vmatpush3.bf16.msra.mxu0 %v3720_v5  ;;  %2955 = vmatpush3.bf16.msra.mxu1 %v3642_v50 }
 0x50c   :  { %2957 = vmatprep.subr.bf16.mxu0 %v3666_v55  ;;  %2988 = vmatprep.subr.bf16.mxu1 %v3471_v0 }
 0x5c1   :  { %v2037_v45 = vpop.f32.mrb[12].mxu0  ;;  %v901_v47 = vpop.f32.mrb[6].mxu1 }
 0x5c2   :  { %v905_v10 = vadd.f32 %v901_v47, %v211_v18  ;;  %v2038_v48 = vpop.f32.mrb[13].mxu0  ;;  %v2500_v49 = vpop.f32.mrb[7].mxu1 }
 0x5c3   :  { %v2039_v51 = vadd.f32 %v2038_v48, %v2037_v45 }
 0x5c4   :  { %v1849_v54 = vmul.f32 -1.442695, %v905_v10 }
 0x5c5   :  { %v812_v56 = vadd.f32 %v2039_v51, %v3781_v37 }
 0x5c6   :  { %3234 = vpow2.f32 %v1849_v54 }
 0x5c7   :  { %v1848_v57 = vmul.f32 -1.442695, %v812_v56  ;;  %3236 = vtanh.f32 %v812_v56 }
 0x5c9   :  { %3238 = vpow2.f32 %v1848_v57 }
 0x5ca   :  { %3240 = vtanh.f32 %v905_v10 }
 0x5d0   :  { %v3235_v23 = vpop.eup %3234 }
 0x5d1   :  { %v3237_v58 = vpop.eup %3236  ;;  %v909_v61 = vadd.f32 1.0, %v3235_v23 }
 0x5d2   :  { %824 = vrot.lane.b32.xlu0 %v3237_v58, %s3476_s22 }
 0x5d3   :  { %v3239_v20 = vpop.eup %3238  ;;  %3242 = vrcp.f32 %v909_v61 }
 0x5d4   :  { %v818_v62 = vadd.f32 1.0, %v3239_v20  ;;  %v3241_v2 = vpop.eup %3240 }
 0x5d6   :  { %3244 = vrcp.f32 %v818_v62  ;;  %915 = vrot.lane.b32.xlu0 %v3241_v2, %s3476_s22 }
 0x5dd   :  { %v3243_v6 = vpop.eup %3242 }
 0x5de   :  { %917 = vrot.lane.b32.xlu0 %v3243_v6, %s3474_s18 }
 0x5e0   :  { %v3245_v11 = vpop.eup %3244 }
 0x5e1   :  { %822 = vrot.lane.b32.xlu1 %v3245_v11, %s3475_s30 }
 0x5e5   :  { %913 = vrot.lane.b32.xlu1 %v3243_v6, %s3475_s30 }
 0x5e9   :  { %826 = vrot.lane.b32.xlu1 %v3245_v11, %s3474_s18 }
 0x644   :  { %v825_v13 = vpop.permute.xlu0 %824 }
 0x645   :  { %v829_v17 = vmul.f32 %v3245_v11, %v825_v13 }
 0x648   :  { %v916_v32 = vpop.permute.xlu0 %915 }
 0x649   :  { %v920_v16 = vmul.f32 %v3243_v6, %v916_v32 }
 0x653   :  { %v823_v14 = vpop.permute.xlu1 %822 }
 0x654   :  { %v828_v31 = vmul.f32 %v823_v14, %v3841_v19  ;;  %v918_v19 = vpop.permute.xlu0 %917 }
 0x656   :  { %v3892_v35 = vadd.f32 %v829_v17, %v828_v31 }
 0x657   :  { %v914_v38 = vpop.permute.xlu1 %913 }
 0x658   :  { %3246 = vtanh.f32 %v3892_v35  ;;  %v919_v41 = vmul.f32 %v914_v38, %v3845_v36  ;;  %v216_v36 = vadd.f32 %v3687_v8, %v3770_v25 }
 0x65a   :  { %v3896_v42 = vadd.f32 %v920_v16, %v919_v41 }
 0x65b   :  { %v827_v44 = vpop.permute.xlu1 %826 }
 0x65c   :  { %3248 = vtanh.f32 %v3896_v42 }
 0x662   :  { %v3247_v12 = vpop.eup %3246 }
 0x663   :  { %v832_v18 = vmul.f32 %v3247_v12, %v827_v44 }
 0x665   :  { %833 = vst [vmem:[#allocation3 + $0x1] sm:$0x2] %v832_v18  ;;  %988 = vmatprep.mubr.f32.mxu0 %v832_v18 }
 0x666   :  { %v3249_v45 = vpop.eup %3248 }
 0x667   :  { %v923_v47 = vmul.f32 %v3249_v45, %v918_v19 }
 0x669   :  { %989 = vmatmul.mubr.f32.vlgmr.msra.gmra.mrb[14].mxu0 %v923_v47  ;;  %2534 = vmatmul.mubr.f32.vlgmr.msra.gmra.mrb[8].mxu1 %v923_v47 }
 0x66a   :  { %2959 = vmatpush3.bf16.msra.mxu0 %v3668_v59  ;;  %2990 = vmatpush3.bf16.msra.mxu1 %v3615_v9 }
 0x66b   :  { %2961 = vmatprep.subr.bf16.mxu0 %v3670_v60  ;;  %2991 = vmatprep.subr.bf16.mxu1 %v3471_v0 }
 0x66c   :  { %2568 = vmatprep.mubr.msk.f32.mxu1 %vm3472_vm0, %v3473_v1 }
 0x66e   :  { %2963 = vmatpush3.bf16.msra.mxu0 %v3674_v3  ;;  %2993 = vmatpush3.bf16.msra.mxu1 %v3618_v15 }
 0x66f   :  { %2965 = vmatprep.subr.bf16.mxu0 %v3677_v4  ;;  %2994 = vmatprep.subr.bf16.mxu1 %v3471_v0 }
 0x672   :  { %2967 = vmatpush3.bf16.msra.mxu0 %v3680_v7  ;;  %2996 = vmatpush3.bf16.msra.mxu1 %v3622_v21 }
 0x673   :  { %2969 = vmatprep.subr.bf16.mxu0 %v3692_v22  ;;  %2997 = vmatprep.subr.bf16.mxu1 %v3471_v0 }
 0x676   :  { %2971 = vmatpush3.bf16.msra.mxu0 %v3694_v26  ;;  %2999 = vmatpush3.bf16.msra.mxu1 %v3626_v28 }
 0x677   :  { %2973 = vmatprep.subr.bf16.mxu0 %v3698_v30  ;;  %3000 = vmatprep.subr.bf16.mxu1 %v3471_v0 }
 0x67a   :  { %2975 = vmatpush3.bf16.msra.mxu0 %v3700_v33  ;;  %3002 = vmatpush3.bf16.msra.mxu1 %v3630_v34 }
 0x67b   :  { %2977 = vmatprep.subr.bf16.mxu0 %v3704_v39  ;;  %3003 = vmatprep.subr.bf16.mxu1 %v3471_v0 }
 0x67e   :  { %2979 = vmatpush3.bf16.msra.mxu0 %v3706_v43  ;;  %3005 = vmatpush3.bf16.msra.mxu1 %v3634_v40 }
 0x67f   :  { %2981 = vmatprep.subr.bf16.mxu0 %v3710_v52  ;;  %3006 = vmatprep.subr.bf16.mxu1 %v3471_v0 }
 0x682   :  { %2983 = vmatpush3.bf16.msra.mxu0 %v3712_v53  ;;  %3008 = vmatpush3.bf16.msra.mxu1 %v3638_v46 }
 0x683   :  { %2985 = vmatprep.subr.bf16.mxu0 %v3715_v63  ;;  %3009 = vmatprep.subr.bf16.mxu1 %v3471_v0 }
 0x686   :  { %2987 = vmatpush3.bf16.msra.mxu0 %v3720_v5  ;;  %3011 = vmatpush3.bf16.msra.mxu1 %v3642_v50 }
 0x687   :  { %3013 = vmatprep.subr.bf16.mxu0 %v3666_v55  ;;  %3044 = vmatprep.subr.bf16.mxu1 %v3471_v0 }
 0x73c   :  { %v2089_v10 = vpop.f32.mrb[14].mxu0  ;;  %v1080_v48 = vpop.f32.mrb[8].mxu1 }
 0x73d   :  { %v1084_v49 = vadd.f32 %v1080_v48, %v216_v36  ;;  %v2090_v51 = vpop.f32.mrb[15].mxu0  ;;  %v2535_v54 = vpop.f32.mrb[9].mxu1 }
 0x73e   :  { %v2091_v56 = vadd.f32 %v2090_v51, %v2089_v10 }
 0x73f   :  { %v1851_v57 = vmul.f32 -1.442695, %v1084_v49 }
 0x740   :  { %v991_v23 = vadd.f32 %v2091_v56, %v3781_v37 }
 0x741   :  { %3250 = vpow2.f32 %v1851_v57 }
 0x742   :  { %v1850_v58 = vmul.f32 -1.442695, %v991_v23  ;;  %3252 = vtanh.f32 %v991_v23 }
 0x744   :  { %3254 = vpow2.f32 %v1850_v58 }
 0x745   :  { %3256 = vtanh.f32 %v1084_v49 }
 0x74b   :  { %v3251_v61 = vpop.eup %3250 }
 0x74c   :  { %v3253_v20 = vpop.eup %3252  ;;  %v1088_v62 = vadd.f32 1.0, %v3251_v61 }
 0x74d   :  { %1003 = vrot.lane.b32.xlu0 %v3253_v20, %s3476_s22 }
 0x74e   :  { %v3255_v25 = vpop.eup %3254  ;;  %3258 = vrcp.f32 %v1088_v62 }
 0x74f   :  { %v997_v2 = vadd.f32 1.0, %v3255_v25  ;;  %v3257_v6 = vpop.eup %3256 }
 0x751   :  { %3260 = vrcp.f32 %v997_v2  ;;  %1094 = vrot.lane.b32.xlu0 %v3257_v6, %s3476_s22 }
 0x758   :  { %v3259_v11 = vpop.eup %3258 }
 0x759   :  { %1096 = vrot.lane.b32.xlu0 %v3259_v11, %s3474_s18 }
 0x75b   :  { %v3261_v13 = vpop.eup %3260 }
 0x75c   :  { %1001 = vrot.lane.b32.xlu1 %v3261_v13, %s3475_s30 }
 0x760   :  { %1092 = vrot.lane.b32.xlu1 %v3259_v11, %s3475_s30 }
 0x764   :  { %1005 = vrot.lane.b32.xlu1 %v3261_v13, %s3474_s18 }
 0x7bf   :  { %v1004_v14 = vpop.permute.xlu0 %1003 }
 0x7c0   :  { %v1008_v31 = vmul.f32 %v3261_v13, %v1004_v14 }
 0x7c3   :  { %v1095_v38 = vpop.permute.xlu0 %1094 }
 0x7c4   :  { %v1099_v12 = vmul.f32 %v3259_v11, %v1095_v38 }
 0x7ce   :  { %v1002_v17 = vpop.permute.xlu1 %1001 }
 0x7cf   :  { %v1007_v32 = vmul.f32 %v1002_v17, %v3892_v35  ;;  %v1097_v35 = vpop.permute.xlu0 %1096 }
 0x7d1   :  { %v3943_v16 = vadd.f32 %v1008_v31, %v1007_v32 }
 0x7d2   :  { %v1093_v41 = vpop.permute.xlu1 %1092 }
 0x7d3   :  { %3262 = vtanh.f32 %v3943_v16  ;;  %v1098_v44 = vmul.f32 %v1093_v41, %v3896_v42  ;;  %v221_v42 = vadd.f32 %v3768_v24, %v3687_v8 }
 0x7d5   :  { %v3947_v18 = vadd.f32 %v1099_v12, %v1098_v44 }
 0x7d6   :  { %v1006_v19 = vpop.permute.xlu1 %1005 }
 0x7d7   :  { %3264 = vtanh.f32 %v3947_v18 }
 0x7dd   :  { %v3263_v45 = vpop.eup %3262 }
 0x7de   :  { %v1011_v47 = vmul.f32 %v3263_v45, %v1006_v19 }
 0x7e0   :  { %1012 = vst [vmem:[#allocation3 + $0x2] sm:$0x2] %v1011_v47  ;;  %1167 = vmatprep.mubr.f32.mxu0 %v1011_v47 }
 0x7e1   :  { %v3265_v36 = vpop.eup %3264 }
 0x7e2   :  { %v1102_v10 = vmul.f32 %v3265_v36, %v1097_v35 }
 0x7e4   :  { %1168 = vmatmul.mubr.f32.vlgmr.msra.gmra.mrb[16].mxu0 %v1102_v10  ;;  %2569 = vmatmul.mubr.f32.vlgmr.msra.gmra.mrb[10].mxu1 %v1102_v10 }
 0x7e5   :  { %3015 = vmatpush3.bf16.msra.mxu0 %v3668_v59  ;;  %3046 = vmatpush3.bf16.msra.mxu1 %v3615_v9 }
 0x7e6   :  { %3017 = vmatprep.subr.bf16.mxu0 %v3670_v60  ;;  %3047 = vmatprep.subr.bf16.mxu1 %v3471_v0 }
 0x7e7   :  { %2603 = vmatprep.mubr.msk.f32.mxu1 %vm3472_vm0, %v3473_v1 }
 0x7e9   :  { %3019 = vmatpush3.bf16.msra.mxu0 %v3674_v3  ;;  %3049 = vmatpush3.bf16.msra.mxu1 %v3618_v15 }
 0x7ea   :  { %3021 = vmatprep.subr.bf16.mxu0 %v3677_v4  ;;  %3050 = vmatprep.subr.bf16.mxu1 %v3471_v0 }
 0x7ed   :  { %3023 = vmatpush3.bf16.msra.mxu0 %v3680_v7  ;;  %3052 = vmatpush3.bf16.msra.mxu1 %v3622_v21 }
 0x7ee   :  { %3025 = vmatprep.subr.bf16.mxu0 %v3692_v22  ;;  %3053 = vmatprep.subr.bf16.mxu1 %v3471_v0 }
 0x7f1   :  { %3027 = vmatpush3.bf16.msra.mxu0 %v3694_v26  ;;  %3055 = vmatpush3.bf16.msra.mxu1 %v3626_v28 }
 0x7f2   :  { %3029 = vmatprep.subr.bf16.mxu0 %v3698_v30  ;;  %3056 = vmatprep.subr.bf16.mxu1 %v3471_v0 }
 0x7f5   :  { %3031 = vmatpush3.bf16.msra.mxu0 %v3700_v33  ;;  %3058 = vmatpush3.bf16.msra.mxu1 %v3630_v34 }
 0x7f6   :  { %3033 = vmatprep.subr.bf16.mxu0 %v3704_v39  ;;  %3059 = vmatprep.subr.bf16.mxu1 %v3471_v0 }
 0x7f9   :  { %3035 = vmatpush3.bf16.msra.mxu0 %v3706_v43  ;;  %3061 = vmatpush3.bf16.msra.mxu1 %v3634_v40 }
 0x7fa   :  { %3037 = vmatprep.subr.bf16.mxu0 %v3710_v52  ;;  %3062 = vmatprep.subr.bf16.mxu1 %v3471_v0 }
 0x7fd   :  { %3039 = vmatpush3.bf16.msra.mxu0 %v3712_v53  ;;  %3064 = vmatpush3.bf16.msra.mxu1 %v3638_v46 }
 0x7fe   :  { %3041 = vmatprep.subr.bf16.mxu0 %v3715_v63  ;;  %3065 = vmatprep.subr.bf16.mxu1 %v3471_v0 }
 0x801   :  { %3043 = vmatpush3.bf16.msra.mxu0 %v3720_v5  ;;  %3067 = vmatpush3.bf16.msra.mxu1 %v3642_v50 }
 0x802   :  { %3069 = vmatprep.subr.bf16.mxu0 %v3666_v55  ;;  %3100 = vmatprep.subr.bf16.mxu1 %v3471_v0 }
 0x8b7   :  { %v2141_v48 = vpop.f32.mrb[16].mxu0  ;;  %v1259_v49 = vpop.f32.mrb[10].mxu1 }
 0x8b8   :  { %v1263_v51 = vadd.f32 %v1259_v49, %v221_v42  ;;  %v2142_v54 = vpop.f32.mrb[17].mxu0  ;;  %v2570_v56 = vpop.f32.mrb[11].mxu1 }
 0x8b9   :  { %v2143_v57 = vadd.f32 %v2142_v54, %v2141_v48 }
 0x8ba   :  { %v1853_v23 = vmul.f32 -1.442695, %v1263_v51 }
 0x8bb   :  { %v1170_v58 = vadd.f32 %v2143_v57, %v3781_v37 }
 0x8bc   :  { %3266 = vpow2.f32 %v1853_v23 }
 0x8bd   :  { %v1852_v61 = vmul.f32 -1.442695, %v1170_v58  ;;  %3268 = vtanh.f32 %v1170_v58 }
 0x8bf   :  { %3270 = vpow2.f32 %v1852_v61 }
 0x8c0   :  { %3272 = vtanh.f32 %v1263_v51 }
 0x8c6   :  { %v3267_v20 = vpop.eup %3266 }
 0x8c7   :  { %v3269_v62 = vpop.eup %3268  ;;  %v1267_v25 = vadd.f32 1.0, %v3267_v20 }
 0x8c8   :  { %1182 = vrot.lane.b32.xlu0 %v3269_v62, %s3476_s22 }
 0x8c9   :  { %v3271_v8 = vpop.eup %3270  ;;  %3274 = vrcp.f32 %v1267_v25 }
 0x8ca   :  { %v1176_v24 = vadd.f32 1.0, %v3271_v8  ;;  %v3273_v2 = vpop.eup %3272 }
 0x8cc   :  { %3276 = vrcp.f32 %v1176_v24  ;;  %1273 = vrot.lane.b32.xlu0 %v3273_v2, %s3476_s22 }
 0x8d3   :  { %v3275_v6 = vpop.eup %3274 }
 0x8d4   :  { %1275 = vrot.lane.b32.xlu0 %v3275_v6, %s3474_s18 }
 0x8d6   :  { %v3277_v11 = vpop.eup %3276 }
 0x8d7   :  { %1180 = vrot.lane.b32.xlu1 %v3277_v11, %s3475_s30 }
 0x8db   :  { %1271 = vrot.lane.b32.xlu1 %v3275_v6, %s3475_s30 }
 0x8df   :  { %1184 = vrot.lane.b32.xlu1 %v3277_v11, %s3474_s18 }
 0x93a   :  { %v1183_v13 = vpop.permute.xlu0 %1182 }
 0x93b   :  { %v1187_v17 = vmul.f32 %v3277_v11, %v1183_v13 }
 0x93e   :  { %v1274_v32 = vpop.permute.xlu0 %1273 }
 0x93f   :  { %v1278_v12 = vmul.f32 %v3275_v6, %v1274_v32 }
 0x949   :  { %v1181_v14 = vpop.permute.xlu1 %1180 }
 0x94a   :  { %v1186_v31 = vmul.f32 %v1181_v14, %v3943_v16  ;;  %v1276_v16 = vpop.permute.xlu0 %1275 }
 0x94c   :  { %v3994_v38 = vadd.f32 %v1187_v17, %v1186_v31 }
 0x94d   :  { %v1272_v41 = vpop.permute.xlu1 %1271 }
 0x94e   :  { %3278 = vtanh.f32 %v3994_v38  ;;  %v1277_v44 = vmul.f32 %v1272_v41, %v3947_v18 }
 0x950   :  { %v3998_v45 = vadd.f32 %v1278_v12, %v1277_v44 }
 0x951   :  { %v1185_v47 = vpop.permute.xlu1 %1184 }
 0x952   :  { %3280 = vtanh.f32 %v3998_v45 }
 0x958   :  { %v3279_v19 = vpop.eup %3278 }
 0x959   :  { %v1190_v36 = vmul.f32 %v3279_v19, %v1185_v47 }
 0x95b   :  { %1191 = vst [vmem:[#allocation3 + $0x3] sm:$0x2] %v1190_v36  ;;  %1346 = vmatprep.mubr.f32.mxu0 %v1190_v36 }
 0x95c   :  { %v3281_v35 = vpop.eup %3280 }
 0x95d   :  { %v1281_v10 = vmul.f32 %v3281_v35, %v1276_v16 }
 0x95f   :  { %1347 = vmatmul.mubr.f32.vlgmr.msra.gmra.mrb[18].mxu0 %v1281_v10  ;;  %2604 = vmatmul.mubr.f32.vlgmr.msra.gmra.mrb[12].mxu1 %v1281_v10 }
 0x960   :  { %3071 = vmatpush3.bf16.msra.mxu0 %v3668_v59  ;;  %3102 = vmatpush3.bf16.msra.mxu1 %v3615_v9  ;;  %v4038_v9 = vld [vmem:[%s4120_s3] ss:$0 sm:$0xff] }
 0x961   :  { %3073 = vmatprep.subr.bf16.mxu0 %v3670_v60  ;;  %3103 = vmatprep.subr.bf16.mxu1 %v3471_v0 }
 0x962   :  { %2638 = vmatprep.mubr.msk.f32.mxu1 %vm3472_vm0, %v3473_v1 }
 0x964   :  { %3075 = vmatpush3.bf16.msra.mxu0 %v3674_v3  ;;  %3105 = vmatpush3.bf16.msra.mxu1 %v3618_v15  ;;  %v226_v15 = vadd.f32 %v4038_v9, %v3774_v29 }
 0x965   :  { %3077 = vmatprep.subr.bf16.mxu0 %v3677_v4  ;;  %3106 = vmatprep.subr.bf16.mxu1 %v3471_v0 }
 0x968   :  { %3079 = vmatpush3.bf16.msra.mxu0 %v3680_v7  ;;  %3108 = vmatpush3.bf16.msra.mxu1 %v3622_v21 }
 0x969   :  { %3081 = vmatprep.subr.bf16.mxu0 %v3692_v22  ;;  %3109 = vmatprep.subr.bf16.mxu1 %v3471_v0 }
 0x96c   :  { %3083 = vmatpush3.bf16.msra.mxu0 %v3694_v26  ;;  %3111 = vmatpush3.bf16.msra.mxu1 %v3626_v28 }
 0x96d   :  { %3085 = vmatprep.subr.bf16.mxu0 %v3698_v30  ;;  %3112 = vmatprep.subr.bf16.mxu1 %v3471_v0 }
 0x970   :  { %3087 = vmatpush3.bf16.msra.mxu0 %v3700_v33  ;;  %3114 = vmatpush3.bf16.msra.mxu1 %v3630_v34 }
 0x971   :  { %3089 = vmatprep.subr.bf16.mxu0 %v3704_v39  ;;  %3115 = vmatprep.subr.bf16.mxu1 %v3471_v0 }
 0x974   :  { %3091 = vmatpush3.bf16.msra.mxu0 %v3706_v43  ;;  %3117 = vmatpush3.bf16.msra.mxu1 %v3634_v40 }
 0x975   :  { %3093 = vmatprep.subr.bf16.mxu0 %v3710_v52  ;;  %3118 = vmatprep.subr.bf16.mxu1 %v3471_v0 }
 0x978   :  { %3095 = vmatpush3.bf16.msra.mxu0 %v3712_v53  ;;  %3120 = vmatpush3.bf16.msra.mxu1 %v3638_v46 }
 0x979   :  { %3097 = vmatprep.subr.bf16.mxu0 %v3715_v63  ;;  %3121 = vmatprep.subr.bf16.mxu1 %v3471_v0 }
 0x97c   :  { %3099 = vmatpush3.bf16.msra.mxu0 %v3720_v5  ;;  %3123 = vmatpush3.bf16.msra.mxu1 %v3642_v50 }
 0x97d   :  { %3125 = vmatprep.subr.bf16.mxu0 %v3666_v55  ;;  %3156 = vmatprep.subr.bf16.mxu1 %v3471_v0 }
 0xa32   :  { %v2193_v21 = vpop.f32.mrb[18].mxu0  ;;  %v1438_v28 = vpop.f32.mrb[12].mxu1 }
 0xa33   :  { %v1442_v34 = vadd.f32 %v1438_v28, %v226_v15  ;;  %v2194_v40 = vpop.f32.mrb[19].mxu0  ;;  %v2605_v46 = vpop.f32.mrb[13].mxu1 }
 0xa34   :  { %v2195_v18 = vadd.f32 %v2194_v40, %v2193_v21 }
 0xa35   :  { %v1855_v42 = vmul.f32 -1.442695, %v1442_v34 }
 0xa36   :  { %v1349_v50 = vadd.f32 %v2195_v18, %v3781_v37 }
 0xa37   :  { %3282 = vpow2.f32 %v1855_v42 }
 0xa38   :  { %v1854_v55 = vmul.f32 -1.442695, %v1349_v50  ;;  %3284 = vtanh.f32 %v1349_v50  ;;  %v3323_v50 = vld [vmem:[%s4122_s5] ss:$0 sm:$0xff] }
 0xa3a   :  { %3286 = vpow2.f32 %v1854_v55 }
 0xa3b   :  { %3288 = vtanh.f32 %v1442_v34 }
 0xa41   :  { %v3283_v48 = vpop.eup %3282 }
 0xa42   :  { %v3285_v49 = vpop.eup %3284  ;;  %v1446_v51 = vadd.f32 1.0, %v3283_v48  ;;  %v1730_v48 = vld [vmem:[#allocation12] sm:$0xff] }
 0xa43   :  { %1361 = vrot.lane.b32.xlu0 %v3285_v49, %s3476_s22  ;;  %v1731_v49 = vld [vmem:[#allocation12 + $0x8] sm:$0xff] }
 0xa44   :  { %v3287_v29 = vpop.eup %3286  ;;  %3290 = vrcp.f32 %v1446_v51  ;;  %v1732_v51 = vld [vmem:[#allocation12 + $0x10] sm:$0xff] }
 0xa45   :  { %v1355_v54 = vadd.f32 1.0, %v3287_v29  ;;  %v3289_v56 = vpop.eup %3288  ;;  %v3157_v29 = vpack.c.bf16 %v1731_v49, %v1730_v48 }
 0xa47   :  { %3292 = vrcp.f32 %v1355_v54  ;;  %1452 = vrot.lane.b32.xlu0 %v3289_v56, %s3476_s22  ;;  %v1733_v54 = vld [vmem:[#allocation12 + $0x18] sm:$0xff] }
 0xa4e   :  { %v3291_v57 = vpop.eup %3290 }
 0xa4f   :  { %1454 = vrot.lane.b32.xlu0 %v3291_v57, %s3474_s18 }
 0xa51   :  { %v3293_v23 = vpop.eup %3292 }
 0xa52   :  { %1359 = vrot.lane.b32.xlu1 %v3293_v23, %s3475_s30 }
 0xa56   :  { %1450 = vrot.lane.b32.xlu1 %v3291_v57, %s3475_s30 }
 0xa5a   :  { %1363 = vrot.lane.b32.xlu1 %v3293_v23, %s3474_s18 }
 0xab5   :  { %v1362_v58 = vpop.permute.xlu0 %1361 }
 0xab6   :  { %v1366_v20 = vmul.f32 %v3293_v23, %v1362_v58 }
 0xab9   :  { %v1453_v25 = vpop.permute.xlu0 %1452 }
 0xaba   :  { %v1457_v2 = vmul.f32 %v3291_v57, %v1453_v25  ;;  %v3160_v57 = vpack.c.bf16 %v1733_v54, %v1732_v51 }
 0xac1   :  { %v1455_v32 = vpop.permute.xlu0 %1454 }
 0xac4   :  { %v1360_v61 = vpop.permute.xlu1 %1359 }
 0xac5   :  { %v1365_v62 = vmul.f32 %v1360_v61, %v3994_v38  ;;  %v1734_v61 = vld [vmem:[#allocation12 + $0x20] sm:$0xff] }
 0xac7   :  { %v4050_v8 = vadd.f32 %v1366_v20, %v1365_v62  ;;  %v1735_v20 = vld [vmem:[#allocation12 + $0x28] sm:$0xff] }
 0xac8   :  { %v1451_v24 = vpop.permute.xlu1 %1450  ;;  %v3163_v25 = vpack.c.bf16 %v1735_v20, %v1734_v61 }
 0xac9   :  { %3294 = vtanh.f32 %v4050_v8  ;;  %v1456_v6 = vmul.f32 %v1451_v24, %v3998_v45  ;;  %v1737_v24 = vld [vmem:[#allocation12 + $0x38] sm:$0xff] }
 0xacb   :  { %v4054_v11 = vadd.f32 %v1457_v2, %v1456_v6  ;;  %v1738_v6 = vld [vmem:[#allocation12 + $0x40] sm:$0xff] }
 0xacc   :  { %v1364_v14 = vpop.permute.xlu1 %1363 }
 0xacd   :  { %3296 = vtanh.f32 %v4054_v11 }
 0xad3   :  { %v3295_v13 = vpop.eup %3294 }
 0xad4   :  { %v1369_v17 = vmul.f32 %v3295_v13, %v1364_v14  ;;  %v1740_v14 = vld [vmem:[#allocation12 + $0x50] sm:$0xff] }
 0xad6   :  { %1370 = vst [vmem:[#allocation3 + $0x4] sm:$0x2] %v1369_v17  ;;  %1525 = vmatprep.mubr.f32.mxu0 %v1369_v17  ;;  %v1741_v17 = vld [vmem:[#allocation12 + $0x58] sm:$0xff] }
 0xad7   :  { %v3297_v31 = vpop.eup %3296 }
 0xad8   :  { %v1460_v38 = vmul.f32 %v3297_v31, %v1455_v32  ;;  %v3172_v32 = vpack.c.bf16 %v1741_v17, %v1740_v14 }
 0xada   :  { %1526 = vmatmul.mubr.f32.vlgmr.msra.gmra.mrb[20].mxu0 %v1460_v38  ;;  %2639 = vmatmul.mubr.f32.vlgmr.msra.gmra.mrb[14].mxu1 %v1460_v38  ;;  %v1742_v38 = vld [vmem:[#allocation12 + $0x60] sm:$0xff] }
 0xadb   :  { %3127 = vmatpush3.bf16.msra.mxu0 %v3668_v59  ;;  %2673 = vmatprep.mubr.msk.f32.mxu1 %vm3472_vm0, %v3473_v1  ;;  %v231_v1 = vadd.f32 %v4038_v9, %v3772_v27 }
 0xadc   :  { %3129 = vmatprep.subr.bf16.mxu0 %v3670_v60  ;;  %3158 = vmatpush3.bf16.msra.mxu1 %v3157_v29 }
 0xadd   :  { %3159 = vmatprep.subr.bf16.mxu1 %v3471_v0 }
 0xadf   :  { %3131 = vmatpush3.bf16.msra.mxu0 %v3674_v3 }
 0xae0   :  { %3133 = vmatprep.subr.bf16.mxu0 %v3677_v4  ;;  %3161 = vmatpush3.bf16.msra.mxu1 %v3160_v57 }
 0xae1   :  { %3162 = vmatprep.subr.bf16.mxu1 %v3471_v0 }
 0xae3   :  { %3135 = vmatpush3.bf16.msra.mxu0 %v3680_v7 }
 0xae4   :  { %3137 = vmatprep.subr.bf16.mxu0 %v3692_v22  ;;  %3164 = vmatpush3.bf16.msra.mxu1 %v3163_v25 }
 0xae5   :  { %3165 = vmatprep.subr.bf16.mxu1 %v3471_v0 }
 0xae7   :  { %3139 = vmatpush3.bf16.msra.mxu0 %v3694_v26 }
 0xae8   :  { %3141 = vmatprep.subr.bf16.mxu0 %v3698_v30 }
 0xaeb   :  { %3143 = vmatpush3.bf16.msra.mxu0 %v3700_v33 }
 0xaec   :  { %3145 = vmatprep.subr.bf16.mxu0 %v3704_v39 }
 0xaef   :  { %3147 = vmatpush3.bf16.msra.mxu0 %v3706_v43 }
 0xaf0   :  { %3149 = vmatprep.subr.bf16.mxu0 %v3710_v52 }
 0xaf3   :  { %3151 = vmatpush3.bf16.msra.mxu0 %v3712_v53 }
 0xaf4   :  { %3153 = vmatprep.subr.bf16.mxu0 %v3715_v63 }
 0xaf7   :  { %3155 = vmatpush3.bf16.msra.mxu0 %v3720_v5 }
 0xbad   :  { %v2245_v59 = vpop.f32.mrb[20].mxu0  ;;  %v1617_v60 = vpop.f32.mrb[14].mxu1 }
 0xbae   :  { %v1621_v3 = vadd.f32 %v1617_v60, %v231_v1  ;;  %v2246_v4 = vpop.f32.mrb[21].mxu0  ;;  %v2640_v7 = vpop.f32.mrb[15].mxu1  ;;  %v1743_v1 = vld [vmem:[#allocation12 + $0x68] sm:$0xff]  ;;  %v1744_v60 = vld [vmem:[#allocation12 + $0x70] sm:$0xff] }
 0xbaf   :  { %v2247_v22 = vadd.f32 %v2246_v4, %v2245_v59  ;;  %v3175_v59 = vpack.c.bf16 %v1743_v1, %v1742_v38 }
 0xbb0   :  { %v1857_v26 = vmul.f32 -1.442695, %v1621_v3 }
 0xbb1   :  { %v1528_v30 = vadd.f32 %v2247_v22, %v3781_v37 }
 0xbb2   :  { %3298 = vpow2.f32 %v1857_v26 }
 0xbb3   :  { %v1856_v33 = vmul.f32 -1.442695, %v1528_v30  ;;  %3300 = vtanh.f32 %v1528_v30 }
 0xbb5   :  { %3302 = vpow2.f32 %v1856_v33 }
 0xbb6   :  { %3304 = vtanh.f32 %v1621_v3  ;;  %v1745_v3 = vld [vmem:[#allocation12 + $0x78] sm:$0xff] }
 0xbb7   :  { %v3178_v4 = vpack.c.bf16 %v1745_v3, %v1744_v60 }
 0xbbc   :  { %v3299_v39 = vpop.eup %3298 }
 0xbbd   :  { %v3301_v43 = vpop.eup %3300  ;;  %v1625_v52 = vadd.f32 1.0, %v3299_v39 }
 0xbbe   :  { %1540 = vrot.lane.b32.xlu0 %v3301_v43, %s3476_s22 }
 0xbbf   :  { %v3303_v53 = vpop.eup %3302  ;;  %3306 = vrcp.f32 %v1625_v52 }
 0xbc0   :  { %v1534_v63 = vadd.f32 1.0, %v3303_v53  ;;  %v3305_v5 = vpop.eup %3304 }
 0xbc2   :  { %3308 = vrcp.f32 %v1534_v63  ;;  %1631 = vrot.lane.b32.xlu0 %v3305_v5, %s3476_s22  ;;  %v1859_v63 = vld [vmem:[%s4124_s7] ss:$0 sm:$0xff] }
 0xbc9   :  { %v3307_v27 = vpop.eup %3306 }
 0xbca   :  { %1633 = vrot.lane.b32.xlu0 %v3307_v27, %s3474_s18 }
 0xbcc   :  { %v3309_v37 = vpop.eup %3308 }
 0xbcd   :  { %1538 = vrot.lane.b32.xlu1 %v3309_v37, %s3475_s30 }
 0xbd1   :  { %1629 = vrot.lane.b32.xlu1 %v3307_v27, %s3475_s30 }
 0xbd5   :  { %1542 = vrot.lane.b32.xlu1 %v3309_v37, %s3474_s18 }
 0xc30   :  { %v1541_v41 = vpop.permute.xlu0 %1540 }
 0xc31   :  { %v1545_v44 = vmul.f32 %v3309_v37, %v1541_v41 }
 0xc34   :  { %v1632_v19 = vpop.permute.xlu0 %1631 }
 0xc35   :  { %v1636_v35 = vmul.f32 %v3307_v27, %v1632_v19 }
 0xc3c   :  { %v1634_v34 = vpop.permute.xlu0 %1633 }
 0xc3f   :  { %v1539_v12 = vpop.permute.xlu1 %1538 }
 0xc40   :  { %v1544_v45 = vmul.f32 %v1539_v12, %v4050_v8  ;;  %v1736_v8 = vld [vmem:[#allocation12 + $0x30] sm:$0xff] }
 0xc41   :  { %v3166_v2 = vpack.c.bf16 %v1737_v24, %v1736_v8 }
 0xc42   :  { %v4084_v47 = vadd.f32 %v1545_v44, %v1544_v45 }
 0xc43   :  { %v1630_v36 = vpop.permute.xlu1 %1629  ;;  %3167 = vmatpush3.bf16.msra.mxu1 %v3166_v2 }
 0xc44   :  { %3310 = vtanh.f32 %v4084_v47  ;;  %v1635_v16 = vmul.f32 %v1630_v36, %v4054_v11  ;;  %3168 = vmatprep.subr.bf16.mxu1 %v3471_v0  ;;  %v1739_v11 = vld [vmem:[#allocation12 + $0x48] sm:$0xff] }
 0xc45   :  { %v3169_v13 = vpack.c.bf16 %v1739_v11, %v1738_v6 }
 0xc46   :  { %v1637_v10 = vadd.f32 %v1636_v35, %v1635_v16 }
 0xc47   :  { %v1543_v15 = vpop.permute.xlu1 %1542  ;;  %3170 = vmatpush3.bf16.msra.mxu1 %v3169_v13 }
 0xc48   :  { %3312 = vtanh.f32 %v1637_v10  ;;  %3171 = vmatprep.subr.bf16.mxu1 %v3471_v0 }
 0xc4b   :  { %3173 = vmatpush3.bf16.msra.mxu1 %v3172_v32 }
 0xc4c   :  { %3174 = vmatprep.subr.bf16.mxu1 %v3471_v0 }
 0xc4e   :  { %v3311_v9 = vpop.eup %3310 }
 0xc4f   :  { %v1548_v21 = vmul.f32 %v3311_v9, %v1543_v15  ;;  %3176 = vmatpush3.bf16.msra.mxu1 %v3175_v59 }
 0xc50   :  { %3177 = vmatprep.subr.bf16.mxu1 %v3471_v0 }
 0xc51   :  { %1549 = vst [vmem:[#allocation3 + $0x5] sm:$0x2] %v1548_v21  ;;  %1704 = vmatprep.mubr.f32.mxu0 %v1548_v21 }
 0xc52   :  { %v3313_v28 = vpop.eup %3312 }
 0xc53   :  { %v1639_v40 = vmul.f32 %v3313_v28, %v1634_v34  ;;  %3179 = vmatpush3.bf16.msra.mxu1 %v3178_v4 }
 0xc55   :  { %1705 = vmatmul.mubr.f32.vlgmr.msra.gmra.mrb[22].mxu0 %v1639_v40 }
 0xd28   :  { %v2297_v46 = vpop.f32.mrb[22].mxu0 }
 0xd29   :  { %v2298_v18 = vpop.f32.mrb[23].mxu0 }
 0xd2a   :  { %v2299_v42 = vadd.f32 %v2298_v18, %v2297_v46 }
 0xd2c   :  { %v1707_v55 = vadd.f32 %v3323_v50, %v2299_v42 }
 0xd2e   :  { %v1858_v56 = vmul.f32 -1.442695, %v1707_v55  ;;  %3314 = vtanh.f32 %v1707_v55 }
 0xd30   :  { %3316 = vpow2.f32 %v1858_v56 }
 0xd38   :  { %v3315_v23 = vpop.eup %3314 }
 0xd39   :  { %1719 = vrot.lane.b32.xlu0 %v3315_v23, %s3476_s22 }
 0xd3a   :  { %v3317_v58 = vpop.eup %3316 }
 0xd3b   :  { %v1713_v62 = vadd.f32 1.0, %v3317_v58 }
 0xd3d   :  { %3318 = vrcp.f32 %v1713_v62 }
 0xd47   :  { %v3319_v31 = vpop.eup %3318 }
 0xd48   :  { %1717 = vrot.lane.b32.xlu1 %v3319_v31, %s3475_s30 }
 0xd4c   :  { %1721 = vrot.lane.b32.xlu1 %v3319_v31, %s3474_s18 }
 0xdab   :  { %v1720_v7 = vpop.permute.xlu0 %1719 }
 0xdac   :  { %v1724_v26 = vmul.f32 %v3319_v31, %v1720_v7 }
 0xdba   :  { %v1718_v22 = vpop.permute.xlu1 %1717 }
 0xdbb   :  { %v1723_v30 = vmul.f32 %v1718_v22, %v4084_v47 }
 0xdbd   :  { %v1725_v33 = vadd.f32 %v1724_v26, %v1723_v30 }
 0xdbe   :  { %v1722_v43 = vpop.permute.xlu1 %1721 }
 0xdbf   :  { %3320 = vtanh.f32 %v1725_v33 }
 0xdc9   :  { %v3321_v39 = vpop.eup %3320 }
 0xdca   :  { %v1727_v52 = vmul.f32 %v3321_v39, %v1722_v43 }
 0xdcc   :  { %1728 = vst [vmem:[#allocation3 + $0x6] sm:$0x2] %v1727_v52 }
 0xdd3   :  { %v1729_v53 = vld [vmem:[#allocation3] sm:$0xff] }
 0xdd4   :  { %2674 = vmatmul.mubr.f32.vlgmr.msra.gmra.mrb[16].mxu1 %v1729_v53 }
 0xea7   :  { %v1819_v0 = vpop.f32.mrb[16].mxu1 }
 0xea8   :  { %v1820_v5 = vadd.f32 %v1859_v63, %v1819_v0  ;;  %v2675_v27 = vpop.f32.mrb[17].mxu1 }
 0xeaa   :  { %1823 = vst [vmem:[#allocation13] sm:$0xff] %v1820_v5 }
 0xeab   :  { %3445 = shalt.err (!%p3442_p2)
}
 0xeac   :  { %s3446_s11 = scalar_lea.hbm %s4125_s8, 128 }
 0xead   :  { %p3447_p3 = scmp.ne.s32.totalorder %s4125_s8, %s3446_s11  ;;  %p3450_p4 = scmp.lt.u32.totalorder %s3446_s11, %s4125_s8 }
 0xeaf   :  { %p3452_p5 = pnand %p3450_p4, %p3447_p3 }
 0xeb1   :  { %3455 = shalt.err (!%p3452_p5)
}
 0xeb2   :  { %1833 = dma.vmem_to_hbm [thread:$0]  %s1831_s28, 128, %s4125_s8, [#allocation6]  }
 0xeb3   :  { %3462 = dma.done.wait [#allocation6], 128  }
 0xeb4   :  { %3463 = vsyncadd [#allocation6], 4294967168 }
 0xeb5   :  { %1837 = vsyncpa [#allocation5], 1 }
 0xeb6   :  { %1838 = vsyncpa [#allocation8], 1 }
 0xeb7   :  { %1839 = vsyncpa [#allocation11], 1 }
 0xeb8   :  { %1840 = vsyncpa [#allocation6], 1 }

</bundles_post_ra>
